<compile_context>
chip_gen: v5e
topology: v5e:2x2
jax: 0.10.0
libtpu: 0.0.40
codegen_flags: <defaults>
</compile_context>

<pallas_src>
import math

import jax
import jax.numpy as jnp
from jax.experimental import pallas as pl
from jax.experimental.pallas import tpu as pltpu

# ----------------------------- config (small, BERT-shaped) -----------------------------
VOCAB = 256
MAX_POS = 32
TYPE_VOCAB = 2
HIDDEN = 128          # bert-base: 768
NUM_LAYERS = 2        # bert-base: 12
NUM_HEADS = 4         # bert-base: 12
HEAD_DIM = HIDDEN // NUM_HEADS
INTERMEDIATE = 512    # bert-base: 3072
HEAD_HIDDEN = 64      # custom_layer first Linear out (768->256 in reference, scaled)
NUM_CLASSES = 4
LN_EPS = 1e-12        # BERT LayerNorm eps

BATCH = 2
SEQ = 8

ACT_DTYPE = jnp.bfloat16   # activations & weights; f32 accumulation everywhere


# ----------------------------- per-generation sizing -----------------------------
def _vmem_capacity_bytes():
    try:
        return int(pltpu.get_tpu_info().vmem_capacity_bytes)
    except Exception:
        return 64 << 20   # conservative (v7x-sized) default


_VMEM_BYTES = _vmem_capacity_bytes()
# 512-row tiles on v5e/v6e (128 MiB VMEM); 256 on v7x (64 MiB physical VMEM).
ROW_TILE_TARGET = 512 if _VMEM_BYTES >= (100 << 20) else 256
# Raise the scoped-VMEM limit, but leave headroom (matters at bert-base scale, harmless here).
VMEM_LIMIT_BYTES = min(96 << 20, max(32 << 20, (_VMEM_BYTES * 3) // 4))


def _row_tile(M):
    """Largest power-of-two multiple-of-8 tile <= ROW_TILE_TARGET that divides M and leaves
    >= 2 grid steps (so a "parallel" row axis can actually split across v7x's 2 TensorCores).
    Falls back to the full extent when M is too small to split."""
    best = M
    t = 8
    while t <= min(ROW_TILE_TARGET, M // 2):
        if M % t == 0:
            best = t
        t *= 2
    return best


def _cparams(n_parallel_axes):
    return pltpu.CompilerParams(
        dimension_semantics=("parallel",) * n_parallel_axes,
        vmem_limit_bytes=VMEM_LIMIT_BYTES,
    )


# ----------------------------- Buffered(1) weight specs (probed) -----------------------------
def _copy_probe_kernel(x_ref, o_ref):
    o_ref[...] = x_ref[...]


def _probe_single_buffering():
    """Check that pipeline_mode=pl.Buffered(1) constructs, lowers and runs on this jax/TPU
    combination.  If not, fall back to default (double-buffered) specs rather than failing."""
    try:
        spec = pl.BlockSpec((8, 128), lambda i: (0, 0), pipeline_mode=pl.Buffered(1))
        f = pl.pallas_call(
            _copy_probe_kernel,
            out_shape=jax.ShapeDtypeStruct((8, 128), jnp.float32),
            grid=(1,),
            in_specs=[spec],
            out_specs=pl.BlockSpec((8, 128), lambda i: (0, 0)),
        )
        jax.block_until_ready(f(jnp.zeros((8, 128), jnp.float32)))
        return True
    except Exception:
        return False


_SINGLE_BUFFER_WEIGHTS = _probe_single_buffering()


def _resident_spec(block_shape, index_map):
    """BlockSpec for a weight whose block index never changes across the grid: single-buffer it
    (double-buffering a constant block is pure VMEM waste -- ~9 MB for w1+w2 at bert-base)."""
    if _SINGLE_BUFFER_WEIGHTS:
        return pl.BlockSpec(block_shape, index_map, pipeline_mode=pl.Buffered(1))
    return pl.BlockSpec(block_shape, index_map)


# ----------------------------- shared LayerNorm math (f32) -----------------------------
def _layernorm_f32(y, g, b):
    mu = jnp.mean(y, axis=-1, keepdims=True)
    yc = y - mu
    var = jnp.mean(yc * yc, axis=-1, keepdims=True)
    return yc * jax.lax.rsqrt(var + LN_EPS) * g + b


# ----------------------------- embedding LayerNorm -----------------------------
def _ln_kernel(x_ref, g_ref, b_ref, o_ref):
    x = x_ref[...].astype(jnp.float32)
    o_ref[...] = _layernorm_f32(x, g_ref[...], b_ref[...]).astype(o_ref.dtype)


def layernorm(x, gamma, beta):
    M, H = x.shape
    tm = _row_tile(M)
    return pl.pallas_call(
        _ln_kernel,
        out_shape=jax.ShapeDtypeStruct((M, H), ACT_DTYPE),
        grid=(M // tm,),
        in_specs=[
            pl.BlockSpec((tm, H), lambda i: (i, 0)),
            pl.BlockSpec((1, H), lambda i: (0, 0)),
            pl.BlockSpec((1, H), lambda i: (0, 0)),
        ],
        out_specs=pl.BlockSpec((tm, H), lambda i: (i, 0)),
        compiler_params=_cparams(1),
    )(x, gamma.reshape(1, H), beta.reshape(1, H))


# ----------------------------- fused attention block -----------------------------
# One kernel per batch element: QKV projection -> per-head attention -> output projection
# -> residual add -> LayerNorm.  The (S, 3H) QKV and per-head contexts never leave VMEM/vregs.
def _attn_block_kernel(x_ref, m_ref, wqkv_ref, bqkv_ref, wo_ref, bo_ref,
                       g_ref, beta_ref, o_ref):
    x = x_ref[0]                                              # (S, H) bf16
    S = x.shape[0]

    # --- fused Q|K|V projection ---
    qkv = jnp.dot(x, wqkv_ref[...], preferred_element_type=jnp.float32) + bqkv_ref[...]
    qkv = qkv.astype(ACT_DTYPE)
    q = qkv[:, 0:HIDDEN]                                      # 128-lane-aligned slices
    k = qkv[:, HIDDEN:2 * HIDDEN]
    v = qkv[:, 2 * HIDDEN:3 * HIDDEN]

    # additive key-padding bias, broadcast ONCE (hoisted out of the head loop)
    mask_b = jnp.broadcast_to(m_ref[0], (S, S)).astype(jnp.float32)

    scale = jnp.float32(1.0 / math.sqrt(HEAD_DIM))
    ctx_heads = []
    for h in range(NUM_HEADS):                                # static unrolled head loop
        sl = slice(h * HEAD_DIM, (h + 1) * HEAD_DIM)
        q_h, k_h, v_h = q[:, sl], k[:, sl], v[:, sl]
        # q . k^T by contracting the minor dims -- no materialized transpose.
        s = jax.lax.dot_general(q_h, k_h, (((1,), (1,)), ((), ())),
                                preferred_element_type=jnp.float32)
        s = s * scale + mask_b
        s = s - jnp.max(s, axis=-1, keepdims=True)
        p = jnp.exp(s)
        p = p * pl.reciprocal(jnp.sum(p, axis=-1, keepdims=True), approx=True)
        # cast each head's context to bf16 before concat (halves lane-packing traffic)
        ctx_heads.append(
            jnp.dot(p.astype(v_h.dtype), v_h,
                    preferred_element_type=jnp.float32).astype(ACT_DTYPE))

    ctx = jnp.concatenate(ctx_heads, axis=-1)                 # (S, H) bf16, lane-dense

    # --- fused output projection + residual + LayerNorm ---
    y = jnp.dot(ctx, wo_ref[...], preferred_element_type=jnp.float32)
    y = y + bo_ref[...] + x.astype(jnp.float32)
    o_ref[0] = _layernorm_f32(y, g_ref[...], beta_ref[...]).astype(o_ref.dtype)


def attention_block(x, mask_bias, wqkv, bqkv, wo, bo, gamma, beta):
    B, S, H = x.shape
    N3 = wqkv.shape[1]
    cost = pl.CostEstimate(
        flops=B * (2 * S * H * N3 + NUM_HEADS * 4 * S * S * HEAD_DIM + 2 * S * H * H),
        transcendentals=B * NUM_HEADS * S * S,
        bytes_accessed=2 * (2 * B * S * H + H * N3 + H * H) + 4 * (B * S + N3 + 3 * H),
    )
    return pl.pallas_call(
        _attn_block_kernel,
        out_shape=jax.ShapeDtypeStruct((B, S, H), ACT_DTYPE),
        grid=(B,),
        in_specs=[
            pl.BlockSpec((1, S, H), lambda b: (b, 0, 0)),
            pl.BlockSpec((1, 1, S), lambda b: (b, 0, 0)),
            _resident_spec((H, N3), lambda b: (0, 0)),   # wqkv resident, single-buffered
            pl.BlockSpec((1, N3), lambda b: (0, 0)),
            _resident_spec((H, H), lambda b: (0, 0)),    # wo resident, single-buffered
            pl.BlockSpec((1, H), lambda b: (0, 0)),
            pl.BlockSpec((1, H), lambda b: (0, 0)),
            pl.BlockSpec((1, H), lambda b: (0, 0)),
        ],
        out_specs=pl.BlockSpec((1, S, H), lambda b: (b, 0, 0)),
        compiler_params=_cparams(1),
        cost_estimate=cost,
    )(x, mask_bias, wqkv, bqkv.reshape(1, N3), wo, bo.reshape(1, H),
      gamma.reshape(1, H), beta.reshape(1, H))


# ----------------------------- fused FFN (w1 + GELU + w2) + residual + LayerNorm -----------------------------
def _ffn_ln_kernel(x_ref, w1_ref, b1_ref, w2_ref, b2_ref, g_ref, beta_ref, o_ref):
    x = x_ref[...]
    h = jnp.dot(x, w1_ref[...], preferred_element_type=jnp.float32) + b1_ref[...]
    # tanh-approx GELU: routes the nonlinearity through the EUP slot instead of a long
    # erf VALU polynomial over the (tm, INTERMEDIATE) f32 intermediate.
    h = jax.nn.gelu(h, approximate=True)
    y = jnp.dot(h.astype(w2_ref.dtype), w2_ref[...], preferred_element_type=jnp.float32)
    y = y + b2_ref[...] + x.astype(jnp.float32)
    o_ref[...] = _layernorm_f32(y, g_ref[...], beta_ref[...]).astype(o_ref.dtype)


def ffn_add_layernorm(x, w1, b1, w2, b2, gamma, beta):
    M, H = x.shape
    I = w1.shape[1]
    tm = _row_tile(M)
    cost = pl.CostEstimate(
        flops=2 * M * H * I + 2 * M * I * H,
        transcendentals=M * I,
        bytes_accessed=2 * (M * H + H * I + I * H + M * H) + 4 * (I + 3 * H),
    )
    return pl.pallas_call(
        _ffn_ln_kernel,
        out_shape=jax.ShapeDtypeStruct((M, H), ACT_DTYPE),
        grid=(M // tm,),
        in_specs=[
            pl.BlockSpec((tm, H), lambda i: (i, 0)),
            _resident_spec((H, I), lambda i: (0, 0)),    # w1 resident, single-buffered
            pl.BlockSpec((1, I), lambda i: (0, 0)),
            _resident_spec((I, H), lambda i: (0, 0)),    # w2 resident, single-buffered
            pl.BlockSpec((1, H), lambda i: (0, 0)),
            pl.BlockSpec((1, H), lambda i: (0, 0)),
            pl.BlockSpec((1, H), lambda i: (0, 0)),
        ],
        out_specs=pl.BlockSpec((tm, H), lambda i: (i, 0)),
        compiler_params=_cparams(1),
        cost_estimate=cost,
    )(x, w1, b1.reshape(1, I), w2, b2.reshape(1, H), gamma.reshape(1, H), beta.reshape(1, H))


# ----------------------------- parameters (deterministic synthetic init) -----------------------------
def init_params(key):
    keys = iter(jax.random.split(key, 8 * NUM_LAYERS + 16))

    def normal(shape, dtype=ACT_DTYPE):
        return (0.02 * jax.random.normal(next(keys), shape, jnp.float32)).astype(dtype)

    params = {
        "word_emb": normal((VOCAB, HIDDEN), jnp.float32),
        "pos_emb": normal((MAX_POS, HIDDEN), jnp.float32),
        "type_emb": normal((TYPE_VOCAB, HIDDEN), jnp.float32),
        "emb_ln_g": jnp.ones((HIDDEN,), jnp.float32),
        "emb_ln_b": jnp.zeros((HIDDEN,), jnp.float32),
        "layers": [],
        # classifier head stays in plain JAX (below MXU/vreg granularity) -> keep f32
        "head_w1": normal((HIDDEN, HEAD_HIDDEN), jnp.float32),
        "head_b1": jnp.zeros((HEAD_HIDDEN,), jnp.float32),
        "head_w2": normal((HEAD_HIDDEN, NUM_CLASSES), jnp.float32),
        "head_b2": jnp.zeros((NUM_CLASSES,), jnp.float32),
    }
    for _ in range(NUM_LAYERS):
        params["layers"].append(
            {
                "wqkv": normal((HIDDEN, 3 * HIDDEN)),           # fused Q|K|V
                "bqkv": jnp.zeros((3 * HIDDEN,), jnp.float32),
                "wo": normal((HIDDEN, HIDDEN)),
                "bo": jnp.zeros((HIDDEN,), jnp.float32),
                "ln1_g": jnp.ones((HIDDEN,), jnp.float32),
                "ln1_b": jnp.zeros((HIDDEN,), jnp.float32),
                "w1": normal((HIDDEN, INTERMEDIATE)),
                "b1": jnp.zeros((INTERMEDIATE,), jnp.float32),
                "w2": normal((INTERMEDIATE, HIDDEN)),
                "b2": jnp.zeros((HIDDEN,), jnp.float32),
                "ln2_g": jnp.ones((HIDDEN,), jnp.float32),
                "ln2_b": jnp.zeros((HIDDEN,), jnp.float32),
            }
        )
    return params


# ----------------------------- forward pass (== BERTClassifier.forward) -----------------------------
def bert_classifier_forward(params, input_ids, attention_mask):
    B, S = input_ids.shape

    # Embedding gathers are plain-JAX glue; sum is cast to bf16 so the (memory-bound)
    # embedding-LayerNorm kernel streams half the bytes (stats stay f32 inside the kernel).
    we = params["word_emb"][input_ids]                               # (B, S, H)
    pe = params["pos_emb"][jnp.arange(S)][None, :, :]                # (1, S, H)
    te = params["type_emb"][jnp.zeros((B, S), jnp.int32)]            # (B, S, H)
    emb = (we + pe + te).reshape(B * S, HIDDEN).astype(ACT_DTYPE)
    x = layernorm(emb, params["emb_ln_g"], params["emb_ln_b"])       # bf16 (B*S, H)

    # Additive key-padding mask, BERT-style: (1 - mask) * -10000, shape (B, 1, S)
    mask_bias = ((1.0 - attention_mask.astype(jnp.float32)) * -10000.0).reshape(B, 1, S)

    for layer in params["layers"]:
        # one fused kernel: QKV proj + MHA + output proj + residual + LN1
        x3 = attention_block(x.reshape(B, S, HIDDEN), mask_bias,
                             layer["wqkv"], layer["bqkv"],
                             layer["wo"], layer["bo"],
                             layer["ln1_g"], layer["ln1_b"])
        x = x3.reshape(B * S, HIDDEN)
        # one fused kernel: w1 + GELU + w2 + residual + LN2
        x = ffn_add_layernorm(x, layer["w1"], layer["b1"], layer["w2"], layer["b2"],
                              layer["ln2_g"], layer["ln2_b"])

    # last_hidden_state[:, 0, :]  (CLS token) -> custom_layer.
    # Plain JAX per perf review: (B,768)x(768,256)x(256,4) is below MXU/vreg granularity
    # on every TPU generation; a Pallas kernel here was pure launch overhead.
    cls = x.reshape(B, S, HIDDEN)[:, 0, :].astype(jnp.float32)
    h = jnp.maximum(jnp.dot(cls, params["head_w1"]) + params["head_b1"], 0.0)
    logits = jnp.dot(h, params["head_w2"]) + params["head_b2"]
    return jax.nn.softmax(logits, axis=-1)


# ----------------------------- main -----------------------------
if __name__ == "__main__":
    key = jax.random.PRNGKey(0)
    k_param, k_ids = jax.random.split(key)

    params = init_params(k_param)
    input_ids = jax.random.randint(k_ids, (BATCH, SEQ), 0, VOCAB, dtype=jnp.int32)
    attention_mask = jnp.ones((BATCH, SEQ), jnp.int32).at[1, SEQ - 2:].set(0)  # some padding

    probs = jax.jit(bert_classifier_forward)(params, input_ids, attention_mask)
    probs = jax.block_until_ready(probs)

    assert probs.shape == (BATCH, NUM_CLASSES)
    assert bool(jnp.all(jnp.isfinite(probs)))
    assert bool(jnp.allclose(jnp.sum(probs, axis=1), 1.0, atol=1e-5))
    print("KERNEL_OK")
</pallas_src>

<mosaic_0001>
module attributes {stable_mosaic.version = 11 : i64} {
  func.func @_copy_probe_kernel(%arg0: i32, %arg1: memref<8x128xf32, #tpu.memory_space<vmem>>, %arg2: memref<8x128xf32, #tpu.memory_space<vmem>>) attributes {dimension_semantics = [#tpu.dimension_semantics<arbitrary>], iteration_bounds = array<i64: 1>, scalar_prefetch = 0 : i64, scratch_operands = 0 : i64, tpu.core_type = #tpu.core_type<tc>, window_params = [{pipeline_mode = #tpu.pipeline_mode<synchronous>, transform_indices = @transform_0, window_bounds = array<i64: 8, 128>}, {pipeline_mode = #tpu.pipeline_mode<synchronous>, transform_indices = @transform_1, window_bounds = array<i64: 8, 128>}]} {
    %c0 = arith.constant 0 : index
    %c0_0 = arith.constant 0 : index
    %0 = vector.load %arg1[%c0, %c0_0] : memref<8x128xf32, #tpu.memory_space<vmem>>, vector<8x128xf32>
    %c0_1 = arith.constant 0 : index
    %c0_2 = arith.constant 0 : index
    %1 = vector.load %arg2[%c0_1, %c0_2] : memref<8x128xf32, #tpu.memory_space<vmem>>, vector<8x128xf32>
    tpu.vector_store %arg2[%c0_1, %c0_2], %0 {strides = array<i32>} : memref<8x128xf32, #tpu.memory_space<vmem>>, vector<8x128xf32>,
    return
  }
  func.func @transform_0(%arg0: i32) -> (i32, i32) {
    %c0_i32 = arith.constant 0 : i32
    %c0_i32_0 = arith.constant 0 : i32
    %c0_i32_1 = arith.constant 0 : i32
    return %c0_i32, %c0_i32_0 : i32, i32
  }
  func.func @transform_1(%arg0: i32) -> (i32, i32) {
    %c0_i32 = arith.constant 0 : i32
    %c0_i32_0 = arith.constant 0 : i32
    %c0_i32_1 = arith.constant 0 : i32
    return %c0_i32, %c0_i32_0 : i32, i32
  }
}

module attributes {stable_mosaic.version = 11 : i64} {
  func.func @_attn_block_kernel(%arg0: i32, %arg1: memref<1x8x128xbf16, #tpu.memory_space<vmem>>, %arg2: memref<1x1x8xf32, #tpu.memory_space<vmem>>, %arg3: memref<128x384xbf16, #tpu.memory_space<vmem>>, %arg4: memref<1x384xf32, #tpu.memory_space<vmem>>, %arg5: memref<128x128xbf16, #tpu.memory_space<vmem>>, %arg6: memref<1x128xf32, #tpu.memory_space<vmem>>, %arg7: memref<1x128xf32, #tpu.memory_space<vmem>>, %arg8: memref<1x128xf32, #tpu.memory_space<vmem>>, %arg9: memref<1x8x128xbf16, #tpu.memory_space<vmem>>) attributes {dimension_semantics = [#tpu.dimension_semantics<parallel>], iteration_bounds = array<i64: 2>, scalar_prefetch = 0 : i64, scratch_operands = 0 : i64, tpu.core_type = #tpu.core_type<tc>, window_params = [{transform_indices = @transform_0, window_bounds = array<i64: 1, 8, 128>}, {transform_indices = @transform_1, window_bounds = array<i64: 1, 1, 8>}, {pipeline_mode = #tpu.pipeline_mode<synchronous>, transform_indices = @transform_2, window_bounds = array<i64: 128, 384>}, {pipeline_mode = #tpu.pipeline_mode<synchronous>, transform_indices = @transform_3, window_bounds = array<i64: 1, 384>}, {pipeline_mode = #tpu.pipeline_mode<synchronous>, transform_indices = @transform_4, window_bounds = array<i64: 128, 128>}, {pipeline_mode = #tpu.pipeline_mode<synchronous>, transform_indices = @transform_5, window_bounds = array<i64: 1, 128>}, {pipeline_mode = #tpu.pipeline_mode<synchronous>, transform_indices = @transform_6, window_bounds = array<i64: 1, 128>}, {pipeline_mode = #tpu.pipeline_mode<synchronous>, transform_indices = @transform_7, window_bounds = array<i64: 1, 128>}, {transform_indices = @transform_8, window_bounds = array<i64: 1, 8, 128>}]} {
    %c0 = arith.constant 0 : index
    %c0_0 = arith.constant 0 : index
    %c0_1 = arith.constant 0 : index
    %0 = vector.load %arg1[%c0, %c0_0, %c0_1] : memref<1x8x128xbf16, #tpu.memory_space<vmem>>, vector<1x8x128xbf16>
    %1 = vector.shape_cast %0 : vector<1x8x128xbf16> to vector<8x128xbf16>
    %c0_2 = arith.constant 0 : index
    %c0_3 = arith.constant 0 : index
    %2 = vector.load %arg3[%c0_2, %c0_3] : memref<128x384xbf16, #tpu.memory_space<vmem>>, vector<128x384xbf16>
    %cst = arith.constant dense<0.000000e+00> : vector<8x384xf32>
    %3 = tpu.matmul %1, %2, %cst {dimension_numbers = #tpu.dot_dimension_numbers<[1], [0], [0], [1], [0, 0, 1, 1], [], []>} : vector<8x128xbf16>, vector<128x384xbf16>, vector<8x384xf32> -> vector<8x384xf32>
    %c0_4 = arith.constant 0 : index
    %c0_5 = arith.constant 0 : index
    %4 = vector.load %arg4[%c0_4, %c0_5] : memref<1x384xf32, #tpu.memory_space<vmem>>, vector<1x384xf32>
    %5 = vector.broadcast %4 : vector<1x384xf32> to vector<8x384xf32>
    %6 = arith.addf %3, %5 : vector<8x384xf32>
    %7 = arith.truncf %6 : vector<8x384xf32> to vector<8x384xbf16>
    %8 = vector.extract_strided_slice %7 {offsets = [0, 0], sizes = [8, 128], strides = [1, 1]} : vector<8x384xbf16> to vector<8x128xbf16>
    %9 = vector.extract_strided_slice %7 {offsets = [0, 128], sizes = [8, 128], strides = [1, 1]} : vector<8x384xbf16> to vector<8x128xbf16>
    %10 = vector.extract_strided_slice %7 {offsets = [0, 256], sizes = [8, 128], strides = [1, 1]} : vector<8x384xbf16> to vector<8x128xbf16>
    %c0_6 = arith.constant 0 : index
    %c0_7 = arith.constant 0 : index
    %c0_8 = arith.constant 0 : index
    %11 = vector.load %arg2[%c0_6, %c0_7, %c0_8] : memref<1x1x8xf32, #tpu.memory_space<vmem>>, vector<1x1x8xf32>
    %12 = vector.shape_cast %11 : vector<1x1x8xf32> to vector<1x8xf32>
    %13 = vector.shape_cast %12 : vector<1x8xf32> to vector<1x8xf32>
    %14 = vector.broadcast %13 : vector<1x8xf32> to vector<8x8xf32>
    %15 = vector.extract_strided_slice %8 {offsets = [0, 0], sizes = [8, 32], strides = [1, 1]} : vector<8x128xbf16> to vector<8x32xbf16>
    %16 = vector.extract_strided_slice %9 {offsets = [0, 0], sizes = [8, 32], strides = [1, 1]} : vector<8x128xbf16> to vector<8x32xbf16>
    %17 = vector.extract_strided_slice %10 {offsets = [0, 0], sizes = [8, 32], strides = [1, 1]} : vector<8x128xbf16> to vector<8x32xbf16>
    %cst_9 = arith.constant dense<0.000000e+00> : vector<8x8xf32>
    %18 = tpu.matmul %15, %16, %cst_9 {dimension_numbers = #tpu.dot_dimension_numbers<[1], [1], [0], [0], [0, 0, 1, 0], [], []>} : vector<8x32xbf16>, vector<8x32xbf16>, vector<8x8xf32> -> vector<8x8xf32>
    %cst_10 = arith.constant 0.176776692 : f32
    %19 = vector.broadcast %cst_10 : f32 to vector<8x8xf32>
    %20 = arith.mulf %18, %19 : vector<8x8xf32>
    %21 = arith.addf %20, %14 : vector<8x8xf32>
    %cst_11 = arith.constant dense<0xFF800000> : vector<8xf32>
    %22 = vector.multi_reduction <maximumf>, %21, %cst_11 [1] : vector<8x8xf32> to vector<8xf32>
    %23 = vector.shape_cast %22 : vector<8xf32> to vector<8x1xf32>
    %24 = vector.broadcast %23 : vector<8x1xf32> to vector<8x8xf32>
    %25 = arith.subf %21, %24 : vector<8x8xf32>
    %26 = math.exp %25 : vector<8x8xf32>
    %cst_12 = arith.constant dense<0.000000e+00> : vector<8xf32>
    %27 = vector.multi_reduction <add>, %26, %cst_12 [1] : vector<8x8xf32> to vector<8xf32>
    %28 = vector.shape_cast %27 : vector<8xf32> to vector<8x1xf32>
    %29 = tpu.reciprocal %28 {approx = true} : vector<8x1xf32> -> vector<8x1xf32>
    %30 = vector.broadcast %29 : vector<8x1xf32> to vector<8x8xf32>
    %31 = arith.mulf %26, %30 : vector<8x8xf32>
    %32 = arith.truncf %31 : vector<8x8xf32> to vector<8x8xbf16>
    %cst_13 = arith.constant dense<0.000000e+00> : vector<8x32xf32>
    %33 = tpu.matmul %32, %17, %cst_13 {dimension_numbers = #tpu.dot_dimension_numbers<[1], [0], [0], [1], [0, 0, 1, 1], [], []>} : vector<8x8xbf16>, vector<8x32xbf16>, vector<8x32xf32> -> vector<8x32xf32>
    %34 = arith.truncf %33 : vector<8x32xf32> to vector<8x32xbf16>
    %35 = vector.extract_strided_slice %8 {offsets = [0, 32], sizes = [8, 32], strides = [1, 1]} : vector<8x128xbf16> to vector<8x32xbf16>
    %36 = vector.extract_strided_slice %9 {offsets = [0, 32], sizes = [8, 32], strides = [1, 1]} : vector<8x128xbf16> to vector<8x32xbf16>
    %37 = vector.extract_strided_slice %10 {offsets = [0, 32], sizes = [8, 32], strides = [1, 1]} : vector<8x128xbf16> to vector<8x32xbf16>
    %cst_14 = arith.constant dense<0.000000e+00> : vector<8x8xf32>
    %38 = tpu.matmul %35, %36, %cst_14 {dimension_numbers = #tpu.dot_dimension_numbers<[1], [1], [0], [0], [0, 0, 1, 0], [], []>} : vector<8x32xbf16>, vector<8x32xbf16>, vector<8x8xf32> -> vector<8x8xf32>
    %cst_15 = arith.constant 0.176776692 : f32
    %39 = vector.broadcast %cst_15 : f32 to vector<8x8xf32>
    %40 = arith.mulf %38, %39 : vector<8x8xf32>
    %41 = arith.addf %40, %14 : vector<8x8xf32>
    %cst_16 = arith.constant dense<0xFF800000> : vector<8xf32>
    %42 = vector.multi_reduction <maximumf>, %41, %cst_16 [1] : vector<8x8xf32> to vector<8xf32>
    %43 = vector.shape_cast %42 : vector<8xf32> to vector<8x1xf32>
    %44 = vector.broadcast %43 : vector<8x1xf32> to vector<8x8xf32>
    %45 = arith.subf %41, %44 : vector<8x8xf32>
    %46 = math.exp %45 : vector<8x8xf32>
    %cst_17 = arith.constant dense<0.000000e+00> : vector<8xf32>
    %47 = vector.multi_reduction <add>, %46, %cst_17 [1] : vector<8x8xf32> to vector<8xf32>
    %48 = vector.shape_cast %47 : vector<8xf32> to vector<8x1xf32>
    %49 = tpu.reciprocal %48 {approx = true} : vector<8x1xf32> -> vector<8x1xf32>
    %50 = vector.broadcast %49 : vector<8x1xf32> to vector<8x8xf32>
    %51 = arith.mulf %46, %50 : vector<8x8xf32>
    %52 = arith.truncf %51 : vector<8x8xf32> to vector<8x8xbf16>
    %cst_18 = arith.constant dense<0.000000e+00> : vector<8x32xf32>
    %53 = tpu.matmul %52, %37, %cst_18 {dimension_numbers = #tpu.dot_dimension_numbers<[1], [0], [0], [1], [0, 0, 1, 1], [], []>} : vector<8x8xbf16>, vector<8x32xbf16>, vector<8x32xf32> -> vector<8x32xf32>
    %54 = arith.truncf %53 : vector<8x32xf32> to vector<8x32xbf16>
    %55 = vector.extract_strided_slice %8 {offsets = [0, 64], sizes = [8, 32], strides = [1, 1]} : vector<8x128xbf16> to vector<8x32xbf16>
    %56 = vector.extract_strided_slice %9 {offsets = [0, 64], sizes = [8, 32], strides = [1, 1]} : vector<8x128xbf16> to vector<8x32xbf16>
    %57 = vector.extract_strided_slice %10 {offsets = [0, 64], sizes = [8, 32], strides = [1, 1]} : vector<8x128xbf16> to vector<8x32xbf16>
    %cst_19 = arith.constant dense<0.000000e+00> : vector<8x8xf32>
    %58 = tpu.matmul %55, %56, %cst_19 {dimension_numbers = #tpu.dot_dimension_numbers<[1], [1], [0], [0], [0, 0, 1, 0], [], []>} : vector<8x32xbf16>, vector<8x32xbf16>, vector<8x8xf32> -> vector<8x8xf32>
    %cst_20 = arith.constant 0.176776692 : f32
    %59 = vector.broadcast %cst_20 : f32 to vector<8x8xf32>
    %60 = arith.mulf %58, %59 : vector<8x8xf32>
    %61 = arith.addf %60, %14 : vector<8x8xf32>
    %cst_21 = arith.constant dense<0xFF800000> : vector<8xf32>
    %62 = vector.multi_reduction <maximumf>, %61, %cst_21 [1] : vector<8x8xf32> to vector<8xf32>
    %63 = vector.shape_cast %62 : vector<8xf32> to vector<8x1xf32>
    %64 = vector.broadcast %63 : vector<8x1xf32> to vector<8x8xf32>
    %65 = arith.subf %61, %64 : vector<8x8xf32>
    %66 = math.exp %65 : vector<8x8xf32>
    %cst_22 = arith.constant dense<0.000000e+00> : vector<8xf32>
    %67 = vector.multi_reduction <add>, %66, %cst_22 [1] : vector<8x8xf32> to vector<8xf32>
    %68 = vector.shape_cast %67 : vector<8xf32> to vector<8x1xf32>
    %69 = tpu.reciprocal %68 {approx = true} : vector<8x1xf32> -> vector<8x1xf32>
    %70 = vector.broadcast %69 : vector<8x1xf32> to vector<8x8xf32>
    %71 = arith.mulf %66, %70 : vector<8x8xf32>
    %72 = arith.truncf %71 : vector<8x8xf32> to vector<8x8xbf16>
    %cst_23 = arith.constant dense<0.000000e+00> : vector<8x32xf32>
    %73 = tpu.matmul %72, %57, %cst_23 {dimension_numbers = #tpu.dot_dimension_numbers<[1], [0], [0], [1], [0, 0, 1, 1], [], []>} : vector<8x8xbf16>, vector<8x32xbf16>, vector<8x32xf32> -> vector<8x32xf32>
    %74 = arith.truncf %73 : vector<8x32xf32> to vector<8x32xbf16>
    %75 = vector.extract_strided_slice %8 {offsets = [0, 96], sizes = [8, 32], strides = [1, 1]} : vector<8x128xbf16> to vector<8x32xbf16>
    %76 = vector.extract_strided_slice %9 {offsets = [0, 96], sizes = [8, 32], strides = [1, 1]} : vector<8x128xbf16> to vector<8x32xbf16>
    %77 = vector.extract_strided_slice %10 {offsets = [0, 96], sizes = [8, 32], strides = [1, 1]} : vector<8x128xbf16> to vector<8x32xbf16>
    %cst_24 = arith.constant dense<0.000000e+00> : vector<8x8xf32>
    %78 = tpu.matmul %75, %76, %cst_24 {dimension_numbers = #tpu.dot_dimension_numbers<[1], [1], [0], [0], [0, 0, 1, 0], [], []>} : vector<8x32xbf16>, vector<8x32xbf16>, vector<8x8xf32> -> vector<8x8xf32>
    %cst_25 = arith.constant 0.176776692 : f32
    %79 = vector.broadcast %cst_25 : f32 to vector<8x8xf32>
    %80 = arith.mulf %78, %79 : vector<8x8xf32>
    %81 = arith.addf %80, %14 : vector<8x8xf32>
    %cst_26 = arith.constant dense<0xFF800000> : vector<8xf32>
    %82 = vector.multi_reduction <maximumf>, %81, %cst_26 [1] : vector<8x8xf32> to vector<8xf32>
    %83 = vector.shape_cast %82 : vector<8xf32> to vector<8x1xf32>
    %84 = vector.broadcast %83 : vector<8x1xf32> to vector<8x8xf32>
    %85 = arith.subf %81, %84 : vector<8x8xf32>
    %86 = math.exp %85 : vector<8x8xf32>
    %cst_27 = arith.constant dense<0.000000e+00> : vector<8xf32>
    %87 = vector.multi_reduction <add>, %86, %cst_27 [1] : vector<8x8xf32> to vector<8xf32>
    %88 = vector.shape_cast %87 : vector<8xf32> to vector<8x1xf32>
    %89 = tpu.reciprocal %88 {approx = true} : vector<8x1xf32> -> vector<8x1xf32>
    %90 = vector.broadcast %89 : vector<8x1xf32> to vector<8x8xf32>
    %91 = arith.mulf %86, %90 : vector<8x8xf32>
    %92 = arith.truncf %91 : vector<8x8xf32> to vector<8x8xbf16>
    %cst_28 = arith.constant dense<0.000000e+00> : vector<8x32xf32>
    %93 = tpu.matmul %92, %77, %cst_28 {dimension_numbers = #tpu.dot_dimension_numbers<[1], [0], [0], [1], [0, 0, 1, 1], [], []>} : vector<8x8xbf16>, vector<8x32xbf16>, vector<8x32xf32> -> vector<8x32xf32>
    %94 = arith.truncf %93 : vector<8x32xf32> to vector<8x32xbf16>
    %95 = tpu.concatenate %34, %54, %74, %94 in 1 : vector<8x32xbf16>, vector<8x32xbf16>, vector<8x32xbf16>, vector<8x32xbf16> -> vector<8x128xbf16>
    %c0_29 = arith.constant 0 : index
    %c0_30 = arith.constant 0 : index
    %96 = vector.load %arg5[%c0_29, %c0_30] : memref<128x128xbf16, #tpu.memory_space<vmem>>, vector<128x128xbf16>
    %cst_31 = arith.constant dense<0.000000e+00> : vector<8x128xf32>
    %97 = tpu.matmul %95, %96, %cst_31 {dimension_numbers = #tpu.dot_dimension_numbers<[1], [0], [0], [1], [0, 0, 1, 1], [], []>} : vector<8x128xbf16>, vector<128x128xbf16>, vector<8x128xf32> -> vector<8x128xf32>
    %c0_32 = arith.constant 0 : index
    %c0_33 = arith.constant 0 : index
    %98 = vector.load %arg6[%c0_32, %c0_33] : memref<1x128xf32, #tpu.memory_space<vmem>>, vector<1x128xf32>
    %99 = vector.broadcast %98 : vector<1x128xf32> to vector<8x128xf32>
    %100 = arith.addf %97, %99 : vector<8x128xf32>
    %101 = arith.extf %1 : vector<8x128xbf16> to vector<8x128xf32>
    %102 = arith.addf %100, %101 : vector<8x128xf32>
    %c0_34 = arith.constant 0 : index
    %c0_35 = arith.constant 0 : index
    %103 = vector.load %arg7[%c0_34, %c0_35] : memref<1x128xf32, #tpu.memory_space<vmem>>, vector<1x128xf32>
    %c0_36 = arith.constant 0 : index
    %c0_37 = arith.constant 0 : index
    %104 = vector.load %arg8[%c0_36, %c0_37] : memref<1x128xf32, #tpu.memory_space<vmem>>, vector<1x128xf32>
    %cst_38 = arith.constant dense<0.000000e+00> : vector<8xf32>
    %105 = vector.multi_reduction <add>, %102, %cst_38 [1] : vector<8x128xf32> to vector<8xf32>
    %106 = vector.shape_cast %105 : vector<8xf32> to vector<8x1xf32>
    %cst_39 = arith.constant 1.280000e+02 : f32
    %107 = vector.broadcast %cst_39 : f32 to vector<8x1xf32>
    %108 = arith.divf %106, %107 : vector<8x1xf32>
    %109 = vector.broadcast %108 : vector<8x1xf32> to vector<8x128xf32>
    %110 = arith.subf %102, %109 : vector<8x128xf32>
    %111 = arith.mulf %110, %110 : vector<8x128xf32>
    %cst_40 = arith.constant dense<0.000000e+00> : vector<8xf32>
    %112 = vector.multi_reduction <add>, %111, %cst_40 [1] : vector<8x128xf32> to vector<8xf32>
    %113 = vector.shape_cast %112 : vector<8xf32> to vector<8x1xf32>
    %cst_41 = arith.constant 1.280000e+02 : f32
    %114 = vector.broadcast %cst_41 : f32 to vector<8x1xf32>
    %115 = arith.divf %113, %114 : vector<8x1xf32>
    %cst_42 = arith.constant 9.99999996E-13 : f32
    %116 = vector.broadcast %cst_42 : f32 to vector<8x1xf32>
    %117 = arith.addf %115, %116 : vector<8x1xf32>
    %118 = math.rsqrt %117 : vector<8x1xf32>
    %119 = vector.broadcast %118 : vector<8x1xf32> to vector<8x128xf32>
    %120 = arith.mulf %110, %119 : vector<8x128xf32>
    %121 = vector.broadcast %103 : vector<1x128xf32> to vector<8x128xf32>
    %122 = arith.mulf %120, %121 : vector<8x128xf32>
    %123 = vector.broadcast %104 : vector<1x128xf32> to vector<8x128xf32>
    %124 = arith.addf %122, %123 : vector<8x128xf32>
    %125 = arith.truncf %124 : vector<8x128xf32> to vector<8x128xbf16>
    %c0_43 = arith.constant 0 : index
    %c0_44 = arith.constant 0 : index
    %c0_45 = arith.constant 0 : index
    %126 = vector.load %arg9[%c0_43, %c0_44, %c0_45] : memref<1x8x128xbf16, #tpu.memory_space<vmem>>, vector<1x8x128xbf16>
    %127 = vector.shape_cast %126 : vector<1x8x128xbf16> to vector<8x128xbf16>
    %128 = vector.shape_cast %125 : vector<8x128xbf16> to vector<1x8x128xbf16>
    tpu.vector_store %arg9[%c0_43, %c0_44, %c0_45], %128 {strides = array<i32>} : memref<1x8x128xbf16, #tpu.memory_space<vmem>>, vector<1x8x128xbf16>,
    return
  }
  func.func @transform_0(%arg0: i32) -> (i32, i32, i32) {
    %c0_i32 = arith.constant 0 : i32
    %c0_i32_0 = arith.constant 0 : i32
    %c0_i32_1 = arith.constant 0 : i32
    return %arg0, %c0_i32, %c0_i32_0 : i32, i32, i32
  }
  func.func @transform_1(%arg0: i32) -> (i32, i32, i32) {
    %c0_i32 = arith.constant 0 : i32
    %c0_i32_0 = arith.constant 0 : i32
    %c0_i32_1 = arith.constant 0 : i32
    return %arg0, %c0_i32, %c0_i32_0 : i32, i32, i32
  }
  func.func @transform_2(%arg0: i32) -> (i32, i32) {
    %c0_i32 = arith.constant 0 : i32
    %c0_i32_0 = arith.constant 0 : i32
    %c0_i32_1 = arith.constant 0 : i32
    return %c0_i32, %c0_i32_0 : i32, i32
  }
  func.func @transform_3(%arg0: i32) -> (i32, i32) {
    %c0_i32 = arith.constant 0 : i32
    %c0_i32_0 = arith.constant 0 : i32
    %c0_i32_1 = arith.constant 0 : i32
    return %c0_i32, %c0_i32_0 : i32, i32
  }
  func.func @transform_4(%arg0: i32) -> (i32, i32) {
    %c0_i32 = arith.constant 0 : i32
    %c0_i32_0 = arith.constant 0 : i32
    %c0_i32_1 = arith.constant 0 : i32
    return %c0_i32, %c0_i32_0 : i32, i32
  }
  func.func @transform_5(%arg0: i32) -> (i32, i32) {
    %c0_i32 = arith.constant 0 : i32
    %c0_i32_0 = arith.constant 0 : i32
    %c0_i32_1 = arith.constant 0 : i32
    return %c0_i32, %c0_i32_0 : i32, i32
  }
  func.func @transform_6(%arg0: i32) -> (i32, i32) {
    %c0_i32 = arith.constant 0 : i32
    %c0_i32_0 = arith.constant 0 : i32
    %c0_i32_1 = arith.constant 0 : i32
    return %c0_i32, %c0_i32_0 : i32, i32
  }
  func.func @transform_7(%arg0: i32) -> (i32, i32) {
    %c0_i32 = arith.constant 0 : i32
    %c0_i32_0 = arith.constant 0 : i32
    %c0_i32_1 = arith.constant 0 : i32
    return %c0_i32, %c0_i32_0 : i32, i32
  }
  func.func @transform_8(%arg0: i32) -> (i32, i32, i32) {
    %c0_i32 = arith.constant 0 : i32
    %c0_i32_0 = arith.constant 0 : i32
    %c0_i32_1 = arith.constant 0 : i32
    return %arg0, %c0_i32, %c0_i32_0 : i32, i32, i32
  }
}

module attributes {stable_mosaic.version = 11 : i64} {
  func.func @_ln_kernel(%arg0: i32, %arg1: memref<8x128xbf16, #tpu.memory_space<vmem>>, %arg2: memref<1x128xf32, #tpu.memory_space<vmem>>, %arg3: memref<1x128xf32, #tpu.memory_space<vmem>>, %arg4: memref<8x128xbf16, #tpu.memory_space<vmem>>) attributes {dimension_semantics = [#tpu.dimension_semantics<parallel>], iteration_bounds = array<i64: 2>, scalar_prefetch = 0 : i64, scratch_operands = 0 : i64, tpu.core_type = #tpu.core_type<tc>, window_params = [{transform_indices = @transform_0, window_bounds = array<i64: 8, 128>}, {pipeline_mode = #tpu.pipeline_mode<synchronous>, transform_indices = @transform_1, window_bounds = array<i64: 1, 128>}, {pipeline_mode = #tpu.pipeline_mode<synchronous>, transform_indices = @transform_2, window_bounds = array<i64: 1, 128>}, {transform_indices = @transform_3, window_bounds = array<i64: 8, 128>}]} {
    %c0 = arith.constant 0 : index
    %c0_0 = arith.constant 0 : index
    %0 = vector.load %arg1[%c0, %c0_0] : memref<8x128xbf16, #tpu.memory_space<vmem>>, vector<8x128xbf16>
    %1 = arith.extf %0 : vector<8x128xbf16> to vector<8x128xf32>
    %c0_1 = arith.constant 0 : index
    %c0_2 = arith.constant 0 : index
    %2 = vector.load %arg2[%c0_1, %c0_2] : memref<1x128xf32, #tpu.memory_space<vmem>>, vector<1x128xf32>
    %c0_3 = arith.constant 0 : index
    %c0_4 = arith.constant 0 : index
    %3 = vector.load %arg3[%c0_3, %c0_4] : memref<1x128xf32, #tpu.memory_space<vmem>>, vector<1x128xf32>
    %cst = arith.constant dense<0.000000e+00> : vector<8xf32>
    %4 = vector.multi_reduction <add>, %1, %cst [1] : vector<8x128xf32> to vector<8xf32>
    %5 = vector.shape_cast %4 : vector<8xf32> to vector<8x1xf32>
    %cst_5 = arith.constant 1.280000e+02 : f32
    %6 = vector.broadcast %cst_5 : f32 to vector<8x1xf32>
    %7 = arith.divf %5, %6 : vector<8x1xf32>
    %8 = vector.broadcast %7 : vector<8x1xf32> to vector<8x128xf32>
    %9 = arith.subf %1, %8 : vector<8x128xf32>
    %10 = arith.mulf %9, %9 : vector<8x128xf32>
    %cst_6 = arith.constant dense<0.000000e+00> : vector<8xf32>
    %11 = vector.multi_reduction <add>, %10, %cst_6 [1] : vector<8x128xf32> to vector<8xf32>
    %12 = vector.shape_cast %11 : vector<8xf32> to vector<8x1xf32>
    %cst_7 = arith.constant 1.280000e+02 : f32
    %13 = vector.broadcast %cst_7 : f32 to vector<8x1xf32>
    %14 = arith.divf %12, %13 : vector<8x1xf32>
    %cst_8 = arith.constant 9.99999996E-13 : f32
    %15 = vector.broadcast %cst_8 : f32 to vector<8x1xf32>
    %16 = arith.addf %14, %15 : vector<8x1xf32>
    %17 = math.rsqrt %16 : vector<8x1xf32>
    %18 = vector.broadcast %17 : vector<8x1xf32> to vector<8x128xf32>
    %19 = arith.mulf %9, %18 : vector<8x128xf32>
    %20 = vector.broadcast %2 : vector<1x128xf32> to vector<8x128xf32>
    %21 = arith.mulf %19, %20 : vector<8x128xf32>
    %22 = vector.broadcast %3 : vector<1x128xf32> to vector<8x128xf32>
    %23 = arith.addf %21, %22 : vector<8x128xf32>
    %24 = arith.truncf %23 : vector<8x128xf32> to vector<8x128xbf16>
    %c0_9 = arith.constant 0 : index
    %c0_10 = arith.constant 0 : index
    %25 = vector.load %arg4[%c0_9, %c0_10] : memref<8x128xbf16, #tpu.memory_space<vmem>>, vector<8x128xbf16>
    tpu.vector_store %arg4[%c0_9, %c0_10], %24 {strides = array<i32>} : memref<8x128xbf16, #tpu.memory_space<vmem>>, vector<8x128xbf16>,
    return
  }
  func.func @transform_0(%arg0: i32) -> (i32, i32) {
    %c0_i32 = arith.constant 0 : i32
    %c0_i32_0 = arith.constant 0 : i32
    return %arg0, %c0_i32 : i32, i32
  }
  func.func @transform_1(%arg0: i32) -> (i32, i32) {
    %c0_i32 = arith.constant 0 : i32
    %c0_i32_0 = arith.constant 0 : i32
    %c0_i32_1 = arith.constant 0 : i32
    return %c0_i32, %c0_i32_0 : i32, i32
  }
  func.func @transform_2(%arg0: i32) -> (i32, i32) {
    %c0_i32 = arith.constant 0 : i32
    %c0_i32_0 = arith.constant 0 : i32
    %c0_i32_1 = arith.constant 0 : i32
    return %c0_i32, %c0_i32_0 : i32, i32
  }
  func.func @transform_3(%arg0: i32) -> (i32, i32) {
    %c0_i32 = arith.constant 0 : i32
    %c0_i32_0 = arith.constant 0 : i32
    return %arg0, %c0_i32 : i32, i32
  }
}

module attributes {stable_mosaic.version = 11 : i64} {
  func.func @_ffn_ln_kernel(%arg0: i32, %arg1: memref<8x128xbf16, #tpu.memory_space<vmem>>, %arg2: memref<128x512xbf16, #tpu.memory_space<vmem>>, %arg3: memref<1x512xf32, #tpu.memory_space<vmem>>, %arg4: memref<512x128xbf16, #tpu.memory_space<vmem>>, %arg5: memref<1x128xf32, #tpu.memory_space<vmem>>, %arg6: memref<1x128xf32, #tpu.memory_space<vmem>>, %arg7: memref<1x128xf32, #tpu.memory_space<vmem>>, %arg8: memref<8x128xbf16, #tpu.memory_space<vmem>>) attributes {dimension_semantics = [#tpu.dimension_semantics<parallel>], iteration_bounds = array<i64: 2>, scalar_prefetch = 0 : i64, scratch_operands = 0 : i64, tpu.core_type = #tpu.core_type<tc>, window_params = [{transform_indices = @transform_0, window_bounds = array<i64: 8, 128>}, {pipeline_mode = #tpu.pipeline_mode<synchronous>, transform_indices = @transform_1, window_bounds = array<i64: 128, 512>}, {pipeline_mode = #tpu.pipeline_mode<synchronous>, transform_indices = @transform_2, window_bounds = array<i64: 1, 512>}, {pipeline_mode = #tpu.pipeline_mode<synchronous>, transform_indices = @transform_3, window_bounds = array<i64: 512, 128>}, {pipeline_mode = #tpu.pipeline_mode<synchronous>, transform_indices = @transform_4, window_bounds = array<i64: 1, 128>}, {pipeline_mode = #tpu.pipeline_mode<synchronous>, transform_indices = @transform_5, window_bounds = array<i64: 1, 128>}, {pipeline_mode = #tpu.pipeline_mode<synchronous>, transform_indices = @transform_6, window_bounds = array<i64: 1, 128>}, {transform_indices = @transform_7, window_bounds = array<i64: 8, 128>}]} {
    %c0 = arith.constant 0 : index
    %c0_0 = arith.constant 0 : index
    %0 = vector.load %arg1[%c0, %c0_0] : memref<8x128xbf16, #tpu.memory_space<vmem>>, vector<8x128xbf16>
    %c0_1 = arith.constant 0 : index
    %c0_2 = arith.constant 0 : index
    %1 = vector.load %arg2[%c0_1, %c0_2] : memref<128x512xbf16, #tpu.memory_space<vmem>>, vector<128x512xbf16>
    %cst = arith.constant dense<0.000000e+00> : vector<8x512xf32>
    %2 = tpu.matmul %0, %1, %cst {dimension_numbers = #tpu.dot_dimension_numbers<[1], [0], [0], [1], [0, 0, 1, 1], [], []>} : vector<8x128xbf16>, vector<128x512xbf16>, vector<8x512xf32> -> vector<8x512xf32>
    %c0_3 = arith.constant 0 : index
    %c0_4 = arith.constant 0 : index
    %3 = vector.load %arg3[%c0_3, %c0_4] : memref<1x512xf32, #tpu.memory_space<vmem>>, vector<1x512xf32>
    %4 = vector.broadcast %3 : vector<1x512xf32> to vector<8x512xf32>
    %5 = arith.addf %2, %4 : vector<8x512xf32>
    %6 = arith.mulf %5, %5 : vector<8x512xf32>
    %7 = arith.mulf %5, %6 : vector<8x512xf32>
    %cst_5 = arith.constant 4.471500e-02 : f32
    %8 = vector.broadcast %cst_5 : f32 to vector<8x512xf32>
    %9 = arith.mulf %8, %7 : vector<8x512xf32>
    %10 = arith.addf %5, %9 : vector<8x512xf32>
    %cst_6 = arith.constant 0.797884583 : f32
    %11 = vector.broadcast %cst_6 : f32 to vector<8x512xf32>
    %12 = arith.mulf %11, %10 : vector<8x512xf32>
    %13 = math.tanh %12 : vector<8x512xf32>
    %cst_7 = arith.constant 1.000000e+00 : f32
    %14 = vector.broadcast %cst_7 : f32 to vector<8x512xf32>
    %15 = arith.addf %14, %13 : vector<8x512xf32>
    %cst_8 = arith.constant 5.000000e-01 : f32
    %16 = vector.broadcast %cst_8 : f32 to vector<8x512xf32>
    %17 = arith.mulf %16, %15 : vector<8x512xf32>
    %18 = arith.mulf %5, %17 : vector<8x512xf32>
    %19 = arith.truncf %18 : vector<8x512xf32> to vector<8x512xbf16>
    %c0_9 = arith.constant 0 : index
    %c0_10 = arith.constant 0 : index
    %20 = vector.load %arg4[%c0_9, %c0_10] : memref<512x128xbf16, #tpu.memory_space<vmem>>, vector<512x128xbf16>
    %cst_11 = arith.constant dense<0.000000e+00> : vector<8x128xf32>
    %21 = tpu.matmul %19, %20, %cst_11 {dimension_numbers = #tpu.dot_dimension_numbers<[1], [0], [0], [1], [0, 0, 1, 1], [], []>} : vector<8x512xbf16>, vector<512x128xbf16>, vector<8x128xf32> -> vector<8x128xf32>
    %c0_12 = arith.constant 0 : index
    %c0_13 = arith.constant 0 : index
    %22 = vector.load %arg5[%c0_12, %c0_13] : memref<1x128xf32, #tpu.memory_space<vmem>>, vector<1x128xf32>
    %23 = vector.broadcast %22 : vector<1x128xf32> to vector<8x128xf32>
    %24 = arith.addf %21, %23 : vector<8x128xf32>
    %25 = arith.extf %0 : vector<8x128xbf16> to vector<8x128xf32>
    %26 = arith.addf %24, %25 : vector<8x128xf32>
    %c0_14 = arith.constant 0 : index
    %c0_15 = arith.constant 0 : index
    %27 = vector.load %arg6[%c0_14, %c0_15] : memref<1x128xf32, #tpu.memory_space<vmem>>, vector<1x128xf32>
    %c0_16 = arith.constant 0 : index
    %c0_17 = arith.constant 0 : index
    %28 = vector.load %arg7[%c0_16, %c0_17] : memref<1x128xf32, #tpu.memory_space<vmem>>, vector<1x128xf32>
    %cst_18 = arith.constant dense<0.000000e+00> : vector<8xf32>
    %29 = vector.multi_reduction <add>, %26, %cst_18 [1] : vector<8x128xf32> to vector<8xf32>
    %30 = vector.shape_cast %29 : vector<8xf32> to vector<8x1xf32>
    %cst_19 = arith.constant 1.280000e+02 : f32
    %31 = vector.broadcast %cst_19 : f32 to vector<8x1xf32>
    %32 = arith.divf %30, %31 : vector<8x1xf32>
    %33 = vector.broadcast %32 : vector<8x1xf32> to vector<8x128xf32>
    %34 = arith.subf %26, %33 : vector<8x128xf32>
    %35 = arith.mulf %34, %34 : vector<8x128xf32>
    %cst_20 = arith.constant dense<0.000000e+00> : vector<8xf32>
    %36 = vector.multi_reduction <add>, %35, %cst_20 [1] : vector<8x128xf32> to vector<8xf32>
    %37 = vector.shape_cast %36 : vector<8xf32> to vector<8x1xf32>
    %cst_21 = arith.constant 1.280000e+02 : f32
    %38 = vector.broadcast %cst_21 : f32 to vector<8x1xf32>
    %39 = arith.divf %37, %38 : vector<8x1xf32>
    %cst_22 = arith.constant 9.99999996E-13 : f32
    %40 = vector.broadcast %cst_22 : f32 to vector<8x1xf32>
    %41 = arith.addf %39, %40 : vector<8x1xf32>
    %42 = math.rsqrt %41 : vector<8x1xf32>
    %43 = vector.broadcast %42 : vector<8x1xf32> to vector<8x128xf32>
    %44 = arith.mulf %34, %43 : vector<8x128xf32>
    %45 = vector.broadcast %27 : vector<1x128xf32> to vector<8x128xf32>
    %46 = arith.mulf %44, %45 : vector<8x128xf32>
    %47 = vector.broadcast %28 : vector<1x128xf32> to vector<8x128xf32>
    %48 = arith.addf %46, %47 : vector<8x128xf32>
    %49 = arith.truncf %48 : vector<8x128xf32> to vector<8x128xbf16>
    %c0_23 = arith.constant 0 : index
    %c0_24 = arith.constant 0 : index
    %50 = vector.load %arg8[%c0_23, %c0_24] : memref<8x128xbf16, #tpu.memory_space<vmem>>, vector<8x128xbf16>
    tpu.vector_store %arg8[%c0_23, %c0_24], %49 {strides = array<i32>} : memref<8x128xbf16, #tpu.memory_space<vmem>>, vector<8x128xbf16>,
    return
  }
  func.func @transform_0(%arg0: i32) -> (i32, i32) {
    %c0_i32 = arith.constant 0 : i32
    %c0_i32_0 = arith.constant 0 : i32
    return %arg0, %c0_i32 : i32, i32
  }
  func.func @transform_1(%arg0: i32) -> (i32, i32) {
    %c0_i32 = arith.constant 0 : i32
    %c0_i32_0 = arith.constant 0 : i32
    %c0_i32_1 = arith.constant 0 : i32
    return %c0_i32, %c0_i32_0 : i32, i32
  }
  func.func @transform_2(%arg0: i32) -> (i32, i32) {
    %c0_i32 = arith.constant 0 : i32
    %c0_i32_0 = arith.constant 0 : i32
    %c0_i32_1 = arith.constant 0 : i32
    return %c0_i32, %c0_i32_0 : i32, i32
  }
  func.func @transform_3(%arg0: i32) -> (i32, i32) {
    %c0_i32 = arith.constant 0 : i32
    %c0_i32_0 = arith.constant 0 : i32
    %c0_i32_1 = arith.constant 0 : i32
    return %c0_i32, %c0_i32_0 : i32, i32
  }
  func.func @transform_4(%arg0: i32) -> (i32, i32) {
    %c0_i32 = arith.constant 0 : i32
    %c0_i32_0 = arith.constant 0 : i32
    %c0_i32_1 = arith.constant 0 : i32
    return %c0_i32, %c0_i32_0 : i32, i32
  }
  func.func @transform_5(%arg0: i32) -> (i32, i32) {
    %c0_i32 = arith.constant 0 : i32
    %c0_i32_0 = arith.constant 0 : i32
    %c0_i32_1 = arith.constant 0 : i32
    return %c0_i32, %c0_i32_0 : i32, i32
  }
  func.func @transform_6(%arg0: i32) -> (i32, i32) {
    %c0_i32 = arith.constant 0 : i32
    %c0_i32_0 = arith.constant 0 : i32
    %c0_i32_1 = arith.constant 0 : i32
    return %c0_i32, %c0_i32_0 : i32, i32
  }
  func.func @transform_7(%arg0: i32) -> (i32, i32) {
    %c0_i32 = arith.constant 0 : i32
    %c0_i32_0 = arith.constant 0 : i32
    return %arg0, %c0_i32 : i32, i32
  }
}

module attributes {stable_mosaic.version = 11 : i64} {
  func.func @_attn_block_kernel(%arg0: i32, %arg1: memref<1x8x128xbf16, #tpu.memory_space<vmem>>, %arg2: memref<1x1x8xf32, #tpu.memory_space<vmem>>, %arg3: memref<128x384xbf16, #tpu.memory_space<vmem>>, %arg4: memref<1x384xf32, #tpu.memory_space<vmem>>, %arg5: memref<128x128xbf16, #tpu.memory_space<vmem>>, %arg6: memref<1x128xf32, #tpu.memory_space<vmem>>, %arg7: memref<1x128xf32, #tpu.memory_space<vmem>>, %arg8: memref<1x128xf32, #tpu.memory_space<vmem>>, %arg9: memref<1x8x128xbf16, #tpu.memory_space<vmem>>) attributes {dimension_semantics = [#tpu.dimension_semantics<parallel>], iteration_bounds = array<i64: 2>, scalar_prefetch = 0 : i64, scratch_operands = 0 : i64, tpu.core_type = #tpu.core_type<tc>, window_params = [{transform_indices = @transform_0, window_bounds = array<i64: 1, 8, 128>}, {transform_indices = @transform_1, window_bounds = array<i64: 1, 1, 8>}, {pipeline_mode = #tpu.pipeline_mode<synchronous>, transform_indices = @transform_2, window_bounds = array<i64: 128, 384>}, {pipeline_mode = #tpu.pipeline_mode<synchronous>, transform_indices = @transform_3, window_bounds = array<i64: 1, 384>}, {pipeline_mode = #tpu.pipeline_mode<synchronous>, transform_indices = @transform_4, window_bounds = array<i64: 128, 128>}, {pipeline_mode = #tpu.pipeline_mode<synchronous>, transform_indices = @transform_5, window_bounds = array<i64: 1, 128>}, {pipeline_mode = #tpu.pipeline_mode<synchronous>, transform_indices = @transform_6, window_bounds = array<i64: 1, 128>}, {pipeline_mode = #tpu.pipeline_mode<synchronous>, transform_indices = @transform_7, window_bounds = array<i64: 1, 128>}, {transform_indices = @transform_8, window_bounds = array<i64: 1, 8, 128>}]} {
    %c0 = arith.constant 0 : index
    %c0_0 = arith.constant 0 : index
    %c0_1 = arith.constant 0 : index
    %0 = vector.load %arg1[%c0, %c0_0, %c0_1] : memref<1x8x128xbf16, #tpu.memory_space<vmem>>, vector<1x8x128xbf16>
    %1 = vector.shape_cast %0 : vector<1x8x128xbf16> to vector<8x128xbf16>
    %c0_2 = arith.constant 0 : index
    %c0_3 = arith.constant 0 : index
    %2 = vector.load %arg3[%c0_2, %c0_3] : memref<128x384xbf16, #tpu.memory_space<vmem>>, vector<128x384xbf16>
    %cst = arith.constant dense<0.000000e+00> : vector<8x384xf32>
    %3 = tpu.matmul %1, %2, %cst {dimension_numbers = #tpu.dot_dimension_numbers<[1], [0], [0], [1], [0, 0, 1, 1], [], []>} : vector<8x128xbf16>, vector<128x384xbf16>, vector<8x384xf32> -> vector<8x384xf32>
    %c0_4 = arith.constant 0 : index
    %c0_5 = arith.constant 0 : index
    %4 = vector.load %arg4[%c0_4, %c0_5] : memref<1x384xf32, #tpu.memory_space<vmem>>, vector<1x384xf32>
    %5 = vector.broadcast %4 : vector<1x384xf32> to vector<8x384xf32>
    %6 = arith.addf %3, %5 : vector<8x384xf32>
    %7 = arith.truncf %6 : vector<8x384xf32> to vector<8x384xbf16>
    %8 = vector.extract_strided_slice %7 {offsets = [0, 0], sizes = [8, 128], strides = [1, 1]} : vector<8x384xbf16> to vector<8x128xbf16>
    %9 = vector.extract_strided_slice %7 {offsets = [0, 128], sizes = [8, 128], strides = [1, 1]} : vector<8x384xbf16> to vector<8x128xbf16>
    %10 = vector.extract_strided_slice %7 {offsets = [0, 256], sizes = [8, 128], strides = [1, 1]} : vector<8x384xbf16> to vector<8x128xbf16>
    %c0_6 = arith.constant 0 : index
    %c0_7 = arith.constant 0 : index
    %c0_8 = arith.constant 0 : index
    %11 = vector.load %arg2[%c0_6, %c0_7, %c0_8] : memref<1x1x8xf32, #tpu.memory_space<vmem>>, vector<1x1x8xf32>
    %12 = vector.shape_cast %11 : vector<1x1x8xf32> to vector<1x8xf32>
    %13 = vector.shape_cast %12 : vector<1x8xf32> to vector<1x8xf32>
    %14 = vector.broadcast %13 : vector<1x8xf32> to vector<8x8xf32>
    %15 = vector.extract_strided_slice %8 {offsets = [0, 0], sizes = [8, 32], strides = [1, 1]} : vector<8x128xbf16> to vector<8x32xbf16>
    %16 = vector.extract_strided_slice %9 {offsets = [0, 0], sizes = [8, 32], strides = [1, 1]} : vector<8x128xbf16> to vector<8x32xbf16>
    %17 = vector.extract_strided_slice %10 {offsets = [0, 0], sizes = [8, 32], strides = [1, 1]} : vector<8x128xbf16> to vector<8x32xbf16>
    %cst_9 = arith.constant dense<0.000000e+00> : vector<8x8xf32>
    %18 = tpu.matmul %15, %16, %cst_9 {dimension_numbers = #tpu.dot_dimension_numbers<[1], [1], [0], [0], [0, 0, 1, 0], [], []>} : vector<8x32xbf16>, vector<8x32xbf16>, vector<8x8xf32> -> vector<8x8xf32>
    %cst_10 = arith.constant 0.176776692 : f32
    %19 = vector.broadcast %cst_10 : f32 to vector<8x8xf32>
    %20 = arith.mulf %18, %19 : vector<8x8xf32>
    %21 = arith.addf %20, %14 : vector<8x8xf32>
    %cst_11 = arith.constant dense<0xFF800000> : vector<8xf32>
    %22 = vector.multi_reduction <maximumf>, %21, %cst_11 [1] : vector<8x8xf32> to vector<8xf32>
    %23 = vector.shape_cast %22 : vector<8xf32> to vector<8x1xf32>
    %24 = vector.broadcast %23 : vector<8x1xf32> to vector<8x8xf32>
    %25 = arith.subf %21, %24 : vector<8x8xf32>
    %26 = math.exp %25 : vector<8x8xf32>
    %cst_12 = arith.constant dense<0.000000e+00> : vector<8xf32>
    %27 = vector.multi_reduction <add>, %26, %cst_12 [1] : vector<8x8xf32> to vector<8xf32>
    %28 = vector.shape_cast %27 : vector<8xf32> to vector<8x1xf32>
    %29 = tpu.reciprocal %28 {approx = true} : vector<8x1xf32> -> vector<8x1xf32>
    %30 = vector.broadcast %29 : vector<8x1xf32> to vector<8x8xf32>
    %31 = arith.mulf %26, %30 : vector<8x8xf32>
    %32 = arith.truncf %31 : vector<8x8xf32> to vector<8x8xbf16>
    %cst_13 = arith.constant dense<0.000000e+00> : vector<8x32xf32>
    %33 = tpu.matmul %32, %17, %cst_13 {dimension_numbers = #tpu.dot_dimension_numbers<[1], [0], [0], [1], [0, 0, 1, 1], [], []>} : vector<8x8xbf16>, vector<8x32xbf16>, vector<8x32xf32> -> vector<8x32xf32>
    %34 = arith.truncf %33 : vector<8x32xf32> to vector<8x32xbf16>
    %35 = vector.extract_strided_slice %8 {offsets = [0, 32], sizes = [8, 32], strides = [1, 1]} : vector<8x128xbf16> to vector<8x32xbf16>
    %36 = vector.extract_strided_slice %9 {offsets = [0, 32], sizes = [8, 32], strides = [1, 1]} : vector<8x128xbf16> to vector<8x32xbf16>
    %37 = vector.extract_strided_slice %10 {offsets = [0, 32], sizes = [8, 32], strides = [1, 1]} : vector<8x128xbf16> to vector<8x32xbf16>
    %cst_14 = arith.constant dense<0.000000e+00> : vector<8x8xf32>
    %38 = tpu.matmul %35, %36, %cst_14 {dimension_numbers = #tpu.dot_dimension_numbers<[1], [1], [0], [0], [0, 0, 1, 0], [], []>} : vector<8x32xbf16>, vector<8x32xbf16>, vector<8x8xf32> -> vector<8x8xf32>
    %cst_15 = arith.constant 0.176776692 : f32
    %39 = vector.broadcast %cst_15 : f32 to vector<8x8xf32>
    %40 = arith.mulf %38, %39 : vector<8x8xf32>
    %41 = arith.addf %40, %14 : vector<8x8xf32>
    %cst_16 = arith.constant dense<0xFF800000> : vector<8xf32>
    %42 = vector.multi_reduction <maximumf>, %41, %cst_16 [1] : vector<8x8xf32> to vector<8xf32>
    %43 = vector.shape_cast %42 : vector<8xf32> to vector<8x1xf32>
    %44 = vector.broadcast %43 : vector<8x1xf32> to vector<8x8xf32>
    %45 = arith.subf %41, %44 : vector<8x8xf32>
    %46 = math.exp %45 : vector<8x8xf32>
    %cst_17 = arith.constant dense<0.000000e+00> : vector<8xf32>
    %47 = vector.multi_reduction <add>, %46, %cst_17 [1] : vector<8x8xf32> to vector<8xf32>
    %48 = vector.shape_cast %47 : vector<8xf32> to vector<8x1xf32>
    %49 = tpu.reciprocal %48 {approx = true} : vector<8x1xf32> -> vector<8x1xf32>
    %50 = vector.broadcast %49 : vector<8x1xf32> to vector<8x8xf32>
    %51 = arith.mulf %46, %50 : vector<8x8xf32>
    %52 = arith.truncf %51 : vector<8x8xf32> to vector<8x8xbf16>
    %cst_18 = arith.constant dense<0.000000e+00> : vector<8x32xf32>
    %53 = tpu.matmul %52, %37, %cst_18 {dimension_numbers = #tpu.dot_dimension_numbers<[1], [0], [0], [1], [0, 0, 1, 1], [], []>} : vector<8x8xbf16>, vector<8x32xbf16>, vector<8x32xf32> -> vector<8x32xf32>
    %54 = arith.truncf %53 : vector<8x32xf32> to vector<8x32xbf16>
    %55 = vector.extract_strided_slice %8 {offsets = [0, 64], sizes = [8, 32], strides = [1, 1]} : vector<8x128xbf16> to vector<8x32xbf16>
    %56 = vector.extract_strided_slice %9 {offsets = [0, 64], sizes = [8, 32], strides = [1, 1]} : vector<8x128xbf16> to vector<8x32xbf16>
    %57 = vector.extract_strided_slice %10 {offsets = [0, 64], sizes = [8, 32], strides = [1, 1]} : vector<8x128xbf16> to vector<8x32xbf16>
    %cst_19 = arith.constant dense<0.000000e+00> : vector<8x8xf32>
    %58 = tpu.matmul %55, %56, %cst_19 {dimension_numbers = #tpu.dot_dimension_numbers<[1], [1], [0], [0], [0, 0, 1, 0], [], []>} : vector<8x32xbf16>, vector<8x32xbf16>, vector<8x8xf32> -> vector<8x8xf32>
    %cst_20 = arith.constant 0.176776692 : f32
    %59 = vector.broadcast %cst_20 : f32 to vector<8x8xf32>
    %60 = arith.mulf %58, %59 : vector<8x8xf32>
    %61 = arith.addf %60, %14 : vector<8x8xf32>
    %cst_21 = arith.constant dense<0xFF800000> : vector<8xf32>
    %62 = vector.multi_reduction <maximumf>, %61, %cst_21 [1] : vector<8x8xf32> to vector<8xf32>
    %63 = vector.shape_cast %62 : vector<8xf32> to vector<8x1xf32>
    %64 = vector.broadcast %63 : vector<8x1xf32> to vector<8x8xf32>
    %65 = arith.subf %61, %64 : vector<8x8xf32>
    %66 = math.exp %65 : vector<8x8xf32>
    %cst_22 = arith.constant dense<0.000000e+00> : vector<8xf32>
    %67 = vector.multi_reduction <add>, %66, %cst_22 [1] : vector<8x8xf32> to vector<8xf32>
    %68 = vector.shape_cast %67 : vector<8xf32> to vector<8x1xf32>
    %69 = tpu.reciprocal %68 {approx = true} : vector<8x1xf32> -> vector<8x1xf32>
    %70 = vector.broadcast %69 : vector<8x1xf32> to vector<8x8xf32>
    %71 = arith.mulf %66, %70 : vector<8x8xf32>
    %72 = arith.truncf %71 : vector<8x8xf32> to vector<8x8xbf16>
    %cst_23 = arith.constant dense<0.000000e+00> : vector<8x32xf32>
    %73 = tpu.matmul %72, %57, %cst_23 {dimension_numbers = #tpu.dot_dimension_numbers<[1], [0], [0], [1], [0, 0, 1, 1], [], []>} : vector<8x8xbf16>, vector<8x32xbf16>, vector<8x32xf32> -> vector<8x32xf32>
    %74 = arith.truncf %73 : vector<8x32xf32> to vector<8x32xbf16>
    %75 = vector.extract_strided_slice %8 {offsets = [0, 96], sizes = [8, 32], strides = [1, 1]} : vector<8x128xbf16> to vector<8x32xbf16>
    %76 = vector.extract_strided_slice %9 {offsets = [0, 96], sizes = [8, 32], strides = [1, 1]} : vector<8x128xbf16> to vector<8x32xbf16>
    %77 = vector.extract_strided_slice %10 {offsets = [0, 96], sizes = [8, 32], strides = [1, 1]} : vector<8x128xbf16> to vector<8x32xbf16>
    %cst_24 = arith.constant dense<0.000000e+00> : vector<8x8xf32>
    %78 = tpu.matmul %75, %76, %cst_24 {dimension_numbers = #tpu.dot_dimension_numbers<[1], [1], [0], [0], [0, 0, 1, 0], [], []>} : vector<8x32xbf16>, vector<8x32xbf16>, vector<8x8xf32> -> vector<8x8xf32>
    %cst_25 = arith.constant 0.176776692 : f32
    %79 = vector.broadcast %cst_25 : f32 to vector<8x8xf32>
    %80 = arith.mulf %78, %79 : vector<8x8xf32>
    %81 = arith.addf %80, %14 : vector<8x8xf32>
    %cst_26 = arith.constant dense<0xFF800000> : vector<8xf32>
    %82 = vector.multi_reduction <maximumf>, %81, %cst_26 [1] : vector<8x8xf32> to vector<8xf32>
    %83 = vector.shape_cast %82 : vector<8xf32> to vector<8x1xf32>
    %84 = vector.broadcast %83 : vector<8x1xf32> to vector<8x8xf32>
    %85 = arith.subf %81, %84 : vector<8x8xf32>
    %86 = math.exp %85 : vector<8x8xf32>
    %cst_27 = arith.constant dense<0.000000e+00> : vector<8xf32>
    %87 = vector.multi_reduction <add>, %86, %cst_27 [1] : vector<8x8xf32> to vector<8xf32>
    %88 = vector.shape_cast %87 : vector<8xf32> to vector<8x1xf32>
    %89 = tpu.reciprocal %88 {approx = true} : vector<8x1xf32> -> vector<8x1xf32>
    %90 = vector.broadcast %89 : vector<8x1xf32> to vector<8x8xf32>
    %91 = arith.mulf %86, %90 : vector<8x8xf32>
    %92 = arith.truncf %91 : vector<8x8xf32> to vector<8x8xbf16>
    %cst_28 = arith.constant dense<0.000000e+00> : vector<8x32xf32>
    %93 = tpu.matmul %92, %77, %cst_28 {dimension_numbers = #tpu.dot_dimension_numbers<[1], [0], [0], [1], [0, 0, 1, 1], [], []>} : vector<8x8xbf16>, vector<8x32xbf16>, vector<8x32xf32> -> vector<8x32xf32>
    %94 = arith.truncf %93 : vector<8x32xf32> to vector<8x32xbf16>
    %95 = tpu.concatenate %34, %54, %74, %94 in 1 : vector<8x32xbf16>, vector<8x32xbf16>, vector<8x32xbf16>, vector<8x32xbf16> -> vector<8x128xbf16>
    %c0_29 = arith.constant 0 : index
    %c0_30 = arith.constant 0 : index
    %96 = vector.load %arg5[%c0_29, %c0_30] : memref<128x128xbf16, #tpu.memory_space<vmem>>, vector<128x128xbf16>
    %cst_31 = arith.constant dense<0.000000e+00> : vector<8x128xf32>
    %97 = tpu.matmul %95, %96, %cst_31 {dimension_numbers = #tpu.dot_dimension_numbers<[1], [0], [0], [1], [0, 0, 1, 1], [], []>} : vector<8x128xbf16>, vector<128x128xbf16>, vector<8x128xf32> -> vector<8x128xf32>
    %c0_32 = arith.constant 0 : index
    %c0_33 = arith.constant 0 : index
    %98 = vector.load %arg6[%c0_32, %c0_33] : memref<1x128xf32, #tpu.memory_space<vmem>>, vector<1x128xf32>
    %99 = vector.broadcast %98 : vector<1x128xf32> to vector<8x128xf32>
    %100 = arith.addf %97, %99 : vector<8x128xf32>
    %101 = arith.extf %1 : vector<8x128xbf16> to vector<8x128xf32>
    %102 = arith.addf %100, %101 : vector<8x128xf32>
    %c0_34 = arith.constant 0 : index
    %c0_35 = arith.constant 0 : index
    %103 = vector.load %arg7[%c0_34, %c0_35] : memref<1x128xf32, #tpu.memory_space<vmem>>, vector<1x128xf32>
    %c0_36 = arith.constant 0 : index
    %c0_37 = arith.constant 0 : index
    %104 = vector.load %arg8[%c0_36, %c0_37] : memref<1x128xf32, #tpu.memory_space<vmem>>, vector<1x128xf32>
    %cst_38 = arith.constant dense<0.000000e+00> : vector<8xf32>
    %105 = vector.multi_reduction <add>, %102, %cst_38 [1] : vector<8x128xf32> to vector<8xf32>
    %106 = vector.shape_cast %105 : vector<8xf32> to vector<8x1xf32>
    %cst_39 = arith.constant 1.280000e+02 : f32
    %107 = vector.broadcast %cst_39 : f32 to vector<8x1xf32>
    %108 = arith.divf %106, %107 : vector<8x1xf32>
    %109 = vector.broadcast %108 : vector<8x1xf32> to vector<8x128xf32>
    %110 = arith.subf %102, %109 : vector<8x128xf32>
    %111 = arith.mulf %110, %110 : vector<8x128xf32>
    %cst_40 = arith.constant dense<0.000000e+00> : vector<8xf32>
    %112 = vector.multi_reduction <add>, %111, %cst_40 [1] : vector<8x128xf32> to vector<8xf32>
    %113 = vector.shape_cast %112 : vector<8xf32> to vector<8x1xf32>
    %cst_41 = arith.constant 1.280000e+02 : f32
    %114 = vector.broadcast %cst_41 : f32 to vector<8x1xf32>
    %115 = arith.divf %113, %114 : vector<8x1xf32>
    %cst_42 = arith.constant 9.99999996E-13 : f32
    %116 = vector.broadcast %cst_42 : f32 to vector<8x1xf32>
    %117 = arith.addf %115, %116 : vector<8x1xf32>
    %118 = math.rsqrt %117 : vector<8x1xf32>
    %119 = vector.broadcast %118 : vector<8x1xf32> to vector<8x128xf32>
    %120 = arith.mulf %110, %119 : vector<8x128xf32>
    %121 = vector.broadcast %103 : vector<1x128xf32> to vector<8x128xf32>
    %122 = arith.mulf %120, %121 : vector<8x128xf32>
    %123 = vector.broadcast %104 : vector<1x128xf32> to vector<8x128xf32>
    %124 = arith.addf %122, %123 : vector<8x128xf32>
    %125 = arith.truncf %124 : vector<8x128xf32> to vector<8x128xbf16>
    %c0_43 = arith.constant 0 : index
    %c0_44 = arith.constant 0 : index
    %c0_45 = arith.constant 0 : index
    %126 = vector.load %arg9[%c0_43, %c0_44, %c0_45] : memref<1x8x128xbf16, #tpu.memory_space<vmem>>, vector<1x8x128xbf16>
    %127 = vector.shape_cast %126 : vector<1x8x128xbf16> to vector<8x128xbf16>
    %128 = vector.shape_cast %125 : vector<8x128xbf16> to vector<1x8x128xbf16>
    tpu.vector_store %arg9[%c0_43, %c0_44, %c0_45], %128 {strides = array<i32>} : memref<1x8x128xbf16, #tpu.memory_space<vmem>>, vector<1x8x128xbf16>,
    return
  }
  func.func @transform_0(%arg0: i32) -> (i32, i32, i32) {
    %c0_i32 = arith.constant 0 : i32
    %c0_i32_0 = arith.constant 0 : i32
    %c0_i32_1 = arith.constant 0 : i32
    return %arg0, %c0_i32, %c0_i32_0 : i32, i32, i32
  }
  func.func @transform_1(%arg0: i32) -> (i32, i32, i32) {
    %c0_i32 = arith.constant 0 : i32
    %c0_i32_0 = arith.constant 0 : i32
    %c0_i32_1 = arith.constant 0 : i32
    return %arg0, %c0_i32, %c0_i32_0 : i32, i32, i32
  }
  func.func @transform_2(%arg0: i32) -> (i32, i32) {
    %c0_i32 = arith.constant 0 : i32
    %c0_i32_0 = arith.constant 0 : i32
    %c0_i32_1 = arith.constant 0 : i32
    return %c0_i32, %c0_i32_0 : i32, i32
  }
  func.func @transform_3(%arg0: i32) -> (i32, i32) {
    %c0_i32 = arith.constant 0 : i32
    %c0_i32_0 = arith.constant 0 : i32
    %c0_i32_1 = arith.constant 0 : i32
    return %c0_i32, %c0_i32_0 : i32, i32
  }
  func.func @transform_4(%arg0: i32) -> (i32, i32) {
    %c0_i32 = arith.constant 0 : i32
    %c0_i32_0 = arith.constant 0 : i32
    %c0_i32_1 = arith.constant 0 : i32
    return %c0_i32, %c0_i32_0 : i32, i32
  }
  func.func @transform_5(%arg0: i32) -> (i32, i32) {
    %c0_i32 = arith.constant 0 : i32
    %c0_i32_0 = arith.constant 0 : i32
    %c0_i32_1 = arith.constant 0 : i32
    return %c0_i32, %c0_i32_0 : i32, i32
  }
  func.func @transform_6(%arg0: i32) -> (i32, i32) {
    %c0_i32 = arith.constant 0 : i32
    %c0_i32_0 = arith.constant 0 : i32
    %c0_i32_1 = arith.constant 0 : i32
    return %c0_i32, %c0_i32_0 : i32, i32
  }
  func.func @transform_7(%arg0: i32) -> (i32, i32) {
    %c0_i32 = arith.constant 0 : i32
    %c0_i32_0 = arith.constant 0 : i32
    %c0_i32_1 = arith.constant 0 : i32
    return %c0_i32, %c0_i32_0 : i32, i32
  }
  func.func @transform_8(%arg0: i32) -> (i32, i32, i32) {
    %c0_i32 = arith.constant 0 : i32
    %c0_i32_0 = arith.constant 0 : i32
    %c0_i32_1 = arith.constant 0 : i32
    return %arg0, %c0_i32, %c0_i32_0 : i32, i32, i32
  }
}

</mosaic_0001>

<bundles_post_ra>
// kernel: tpu_custom_call.1
= control target key start
LH: loop header
LB: loop body
LE: loop exit
PB: predicated region body
PF: predicated region fallthrough
CT: control target
= control target key end

     0   :  { %6 = vsyncpa [#allocation3], 0  ;;  %s114_s0 = inlined_call_operand.hbm [shape: f32[8,128], index: 0, kind: input, shape index: {}]   ;;  %s115_s1 = inlined_call_operand.hbm [shape: f32[8,128], index: 1, kind: output, shape index: {}]  }
   0x1   :  { %7 = vsyncpa [#allocation4], 0  ;;  %s13_s8 = sshll.u32 %s114_s0, 4  ;;  %s96_s9 = smov [#allocation2]   ;;  %s14_s8 = int_to_ptr.hbm [resolvable:$true] %s13_s8 }
   0x2   :  { %s15_s10 = sshll.u32 %s96_s9, 4  ;;  %s16_s10 = int_to_ptr.vmem [resolvable:$true] %s15_s10 }
   0x3   :  { %18 = dma.hbm_to_vmem [thread:$0]  %s14_s8, 128, %s16_s10, [#allocation3]  }
   0x4   :  { %92 = dma.done.wait [#allocation3], 128  }
   0x5   :  { %93 = vsyncadd [#allocation3], 4294967168  ;;  %s97_s11 = smov [#allocation5]   ;;  %s32_s15 = sshll.u32 %s115_s1, 4  ;;  %v23_v0 = vld [vmem:[#allocation2] sm:$0xff]  ;;  %s33_s15 = int_to_ptr.hbm [resolvable:$true] %s32_s15 }
   0x6   :  { %s30_s12 = sshll.u32 %s97_s11, 4  ;;  %24 = vst [vmem:[#allocation5] sm:$0xff] %v23_v0  ;;  %s31_s12 = int_to_ptr.vmem [resolvable:$true] %s30_s12 }
   0x7   :  { %35 = dma.vmem_to_hbm [thread:$0]  %s31_s12, 128, %s33_s15, [#allocation4]  }
   0x8   :  { %94 = dma.done.wait [#allocation4], 128  }
   0x9   :  { %95 = vsyncadd [#allocation4], 4294967168 }
   0xa   :  { %40 = vsyncpa [#allocation3], 1 }
   0xb   :  { %41 = vsyncpa [#allocation4], 1 }

// kernel: bert_classifier_forward.5
= control target key start
LH: loop header
LB: loop body
LE: loop exit
PB: predicated region body
PF: predicated region fallthrough
CT: control target
= control target key end

     0   :  { %s313_s12 = smov 0   ;;  %s343_s0 = inlined_call_operand.vmem [shape: bf16[16,128], index: 0, kind: input, shape index: {}]   ;;  %s344_s1 = inlined_call_operand.vmem [shape: f32[1,128], index: 1, kind: input, shape index: {}]   ;;  %s345_s2 = inlined_call_operand.vmem [shape: f32[1,128], index: 2, kind: input, shape index: {}]   ;;  %s346_s3 = inlined_call_operand.vmem [shape: bf16[16,128], index: 3, kind: output, shape index: {}]  }
   0x1 LB: > { %s260_s13 = sadd.s32 4294967295, %s290_s12   ;;  %p264_p0 = scmp.ge.s32.totalorder %s290_s12, 1  ;;  %s290_s12 = sphi %s313_s12, %s13_s12  }
   0x2   : > { %p136_p1 = scmp.lt.s32.totalorder %s290_s12, 3 }
   0x4   : > { %p137_p2 = pnand %p264_p0, %p136_p1 }
   0x5   : > { %p158_p3 = scmp.lt.s32.totalorder (!%p137_p2), %s260_s13, 1 }
   0x6   : > { %140 = sbr.rel (%p137_p2) target bundleno = 286 (0x11e), region = 32 }
   0xb   : > { %s348_s13 = smov (!%p158_p3, %s260_s13), 1  ;;  %v292_v2 = vmov 128.0   ;;  %v278_v22 = vld [vmem:[%s344_s1] ss:$0 sm:$0xff] }
   0xc   : > { %s265_s14 = sshll.u32 %s348_s13, 2  ;;  %280 = vrcp.f32 %v292_v2  ;;  %v279_v24 = vld [vmem:[%s345_s2] ss:$0 sm:$0xff] }
   0xd   : > { %s161_s17 = scalar_lea.vmem %s343_s0, %s265_s14  ;;  %s165_s24 = scalar_lea.vmem %s346_s3, %s265_s14 }
   0xe   : > { %v166_v0 = vld [vmem:[%s161_s17] sm:$0xf] }
   0xf   : > { %v167_v1 = vunpack.c.l.bf16 %v166_v0 }
  0x11   : > { %170 = vadd.xlane.f32.xlu0 %v167_v1 }
  0x12   : > { %v281_v3 = vpop.eup %280 }
  0x13   : > { %v173_v4 = vmul.f32 128.0, %v281_v3  ;;  %vm177_vm0 = vweird.f32 %v281_v3 }
  0x15   : > { %v174_v5 = vsub.f32 1.0, %v173_v4 }
  0x17   : > { %v175_v6 = vmul.f32 %v281_v3, %v174_v5 }
  0x19   : > { %v176_v7 = vadd.f32 %v281_v3, %v175_v6 }
  0x1b   : > { %v178_v8 = vsel %vm177_vm0, %v281_v3, %v176_v7 }
  0x84   : > { %v171_v9 = vpop.xlane.xlu0 %170 }
  0x85   : > { %v179_v10 = vmul.f32 %v178_v8, %v171_v9 }
  0x87   : > { %v180_v11 = vsub.f32 %v167_v1, %v179_v10 }
  0x89   : > { %v181_v12 = vmul.f32 %v180_v11, %v180_v11 }
  0x8b   : > { %182 = vadd.xlane.f32.xlu0 %v181_v12 }
  0xfe   : > { %v183_v13 = vpop.xlane.xlu0 %182 }
  0xff   : > { %v184_v14 = vmul.f32 %v183_v13, %v178_v8 }
 0x101   : > { %v185_v15 = vadd.f32 1e-12, %v184_v14 }
 0x103   : > { %282 = vrsqrt.f32 %v185_v15  ;;  %vm192_vm2 = vweird.f32 %v185_v15 }
 0x109   : > { %v283_v16 = vpop.eup %282 }
 0x10a   : > { %v187_v17 = vmul.f32 %v283_v16, %v185_v15  ;;  %vm193_vm1 = vweird.f32 %v283_v16 }
 0x10b   : > { %vm194_vm3 = vmor %vm192_vm2, %vm193_vm1 }
 0x10c   : > { %v188_v18 = vmul.f32 %v283_v16, %v187_v17 }
 0x10e   : > { %v189_v19 = vmul.f32 0.5, %v188_v18 }
 0x110   : > { %v190_v20 = vsub.f32 1.5, %v189_v19 }
 0x112   : > { %v191_v21 = vmul.f32 %v283_v16, %v190_v20 }
 0x114   : > { %v195_v23 = vsel %vm194_vm3, %v283_v16, %v191_v21 }
 0x115   : > { %v196_v25 = vmul.f32 %v195_v23, %v180_v11 }
 0x117   : > { %v200_v26 = vmul.f32 %v278_v22, %v196_v25 }
 0x119   : > { %v204_v27 = vadd.f32 %v279_v24, %v200_v26 }
 0x11b   : > { %v205_v28 = vpack.c.bf16 %v204_v27, %v204_v27 }
 0x11d   : > { %206 = vst [vmem:[%s165_s24] sm:$0xf] %v205_v28 }
 0x11e PF: > { %s13_s12 = sadd.s32 1, %s290_s12  }
 0x11f   : > { %p10_p4 = scmp.ge.s32.totalorder %s13_s12, 4  }
 0x121   :  { %12 = sbr.rel (!%p10_p4) target bundleno = 1 (0x1), region = 62 }

// kernel: bert_classifier_forward.8
= control target key start
LH: loop header
LB: loop body
LE: loop exit
PB: predicated region body
PF: predicated region fallthrough
CT: control target
= control target key end

     0   :  { %s1250_s27 = smov 0   ;;  %s1518_s0 = inlined_call_operand.vmem [shape: bf16[2,8,128], index: 0, kind: input, shape index: {}]   ;;  %s1519_s1 = inlined_call_operand.vmem [shape: f32[2,1,8], index: 1, kind: input, shape index: {}]   ;;  %s1520_s2 = inlined_call_operand.vmem [shape: bf16[128,384], index: 2, kind: input, shape index: {}]   ;;  %s1521_s3 = inlined_call_operand.vmem [shape: f32[1,384], index: 3, kind: input, shape index: {}]   ;;  %s1522_s4 = inlined_call_operand.vmem [shape: bf16[128,128], index: 4, kind: input, shape index: {}]   ;;  %s1523_s5 = inlined_call_operand.vmem [shape: f32[1,128], index: 5, kind: input, shape index: {}]   ;;  %s1524_s6 = inlined_call_operand.vmem [shape: f32[1,128], index: 6, kind: input, shape index: {}]   ;;  %s1525_s7 = inlined_call_operand.vmem [shape: f32[1,128], index: 7, kind: input, shape index: {}]   ;;  %s1526_s8 = inlined_call_operand.vmem [shape: bf16[2,8,128], index: 8, kind: output, shape index: {}]  }
   0x1 LB: > { %s980_s28 = sadd.s32 4294967295, %s1199_s27   ;;  %p984_p0 = scmp.ge.s32.totalorder %s1199_s27, 1  ;;  %s1199_s27 = sphi %s1250_s27, %s18_s27  }
   0x2   : > { %p269_p1 = scmp.lt.s32.totalorder %s1199_s27, 3 }
   0x4   : > { %p270_p2 = pnand %p984_p0, %p269_p1 }
   0x5   : > { %p304_p3 = scmp.lt.s32.totalorder (!%p270_p2), %s980_s28, 1  ;;  %s1201_s14 = smov (!%p270_p2), 64  }
   0x6   : > { %273 = sbr.rel (%p270_p2) target bundleno = 1669 (0x685), region = 52  ;;  %s1202_s16 = smov (!%p270_p2), 96  }
   0x7   : > { %s1203_s18 = smov (!%p270_p2), 32  }
   0xb   : > { %v1073_v0 = vld [vmem:[%s1520_s2 + $0xa8] sm:$0xf]  ;;  %v1147_v1 = vld [vmem:[%s1520_s2 + $0xb0] sm:$0xf0]  ;;  %v1146_v2 = vld [vmem:[%s1520_s2 + $0xac] sm:$0xf] }
   0xc   : > { %v1074_v3 = vor.u32 %v1147_v1, %v1073_v0  ;;  %v1075_v4 = vld [vmem:[%s1520_s2 + $0xb4] sm:$0xf0]  ;;  %v1061_v5 = vld [vmem:[%s1520_s2 + $0x90] sm:$0xf]  ;;  %v1144_v6 = vld [vmem:[%s1520_s2 + $0x98] sm:$0xf0] }
   0xd   : > { %v1078_v7 = vor.u32 %v1146_v2, %v1075_v4  ;;  %v1143_v8 = vld [vmem:[%s1520_s2 + $0x94] sm:$0xf]  ;;  %v1063_v9 = vld [vmem:[%s1520_s2 + $0x9c] sm:$0xf0]  ;;  %v1062_v10 = vor.u32 %v1144_v6, %v1061_v5  ;;  %v1049_v12 = vld [vmem:[%s1520_s2 + $0x78] sm:$0xf] }
   0xe   : > { %485 = vmatpush.bf16.msra.mxu0 %v1074_v3  ;;  %v1066_v11 = vor.u32 %v1143_v8, %v1063_v9  ;;  %v1141_v13 = vld [vmem:[%s1520_s2 + $0x80] sm:$0xf0]  ;;  %v1140_v14 = vld [vmem:[%s1520_s2 + $0x7c] sm:$0xf]  ;;  %v1051_v15 = vld [vmem:[%s1520_s2 + $0x84] sm:$0xf0] }
   0xf   : > { %498 = vmatpush.bf16.msra.mxu1 %v1078_v7  ;;  %v1050_v16 = vor.u32 %v1141_v13, %v1049_v12  ;;  %v1054_v17 = vor.u32 %v1140_v14, %v1051_v15  ;;  %v1037_v18 = vld [vmem:[%s1520_s2 + $0x60] sm:$0xf]  ;;  %v1138_v19 = vld [vmem:[%s1520_s2 + $0x68] sm:$0xf0]  ;;  %v1137_v20 = vld [vmem:[%s1520_s2 + $0x64] sm:$0xf] }
  0x10   : > { %v1039_v21 = vld [vmem:[%s1520_s2 + $0x6c] sm:$0xf0]  ;;  %v1025_v22 = vld [vmem:[%s1520_s2 + $0x48] sm:$0xf]  ;;  %v1038_v23 = vor.u32 %v1138_v19, %v1037_v18  ;;  %v1148_v25 = vld [vmem:[%s1520_s2 + $0xb8] sm:$0xf0] }
  0x11   : > { %v1081_v24 = vld [vmem:[%s1520_s2 + $0xb0] sm:$0xf]  ;;  %v1069_v26 = vld [vmem:[%s1520_s2 + $0x98] sm:$0xf]  ;;  %v1042_v27 = vor.u32 %v1137_v20, %v1039_v21  ;;  %v1135_v28 = vld [vmem:[%s1520_s2 + $0x50] sm:$0xf0] }
  0x12   : > { %486 = vmatpush.bf16.msra.mxu0 %v1062_v10  ;;  %s1528_s28 = smov (!%p304_p3, %s980_s28), 1  ;;  %v1082_v29 = vor.u32 %v1148_v25, %v1081_v24  ;;  %v1145_v30 = vld [vmem:[%s1520_s2 + $0xa0] sm:$0xf0]  ;;  %v1134_v31 = vld [vmem:[%s1520_s2 + $0x4c] sm:$0xf]  ;;  %v1026_v34 = vor.u32 %v1135_v28, %v1025_v22  ;;  %vm533_vm0 = vcmask 261120  }
  0x13   : > { %499 = vmatpush.bf16.msra.mxu1 %v1066_v11  ;;  %v1027_v32 = vld [vmem:[%s1520_s2 + $0x54] sm:$0xf0]  ;;  %s310_s17 = scalar_lea.vmem %s1519_s1, %s1528_s28  ;;  %v1070_v33 = vor.u32 %v1145_v30, %v1069_v26  ;;  %v1057_v35 = vld [vmem:[%s1520_s2 + $0x80] sm:$0xf]  ;;  %v1142_v36 = vld [vmem:[%s1520_s2 + $0x88] sm:$0xf0] }
  0x14   : > { %511 = vmatpush.bf16.msra.mxu2 %v1082_v29  ;;  %v1030_v37 = vor.u32 %v1134_v31, %v1027_v32  ;;  %v1013_v38 = vld [vmem:[%s1520_s2 + $0x30] sm:$0xf]  ;;  %v1132_v39 = vld [vmem:[%s1520_s2 + $0x38] sm:$0xf0]  ;;  %v1131_v40 = vld [vmem:[%s1520_s2 + $0x34] sm:$0xf]  ;;  %v1058_v42 = vor.u32 %v1142_v36, %v1057_v35 }
  0x15   : > { %v1015_v41 = vld [vmem:[%s1520_s2 + $0x3c] sm:$0xf0]  ;;  %v1014_v43 = vor.u32 %v1132_v39, %v1013_v38  ;;  %v1045_v44 = vld [vmem:[%s1520_s2 + $0x68] sm:$0xf]  ;;  %v1139_v45 = vld [vmem:[%s1520_s2 + $0x70] sm:$0xf0] }
  0x16   : > { %487 = vmatpush.bf16.msra.mxu0 %v1050_v16  ;;  %v1018_v46 = vor.u32 %v1131_v40, %v1015_v41  ;;  %v1001_v47 = vld [vmem:[%s1520_s2 + $0x18] sm:$0xf]  ;;  %v1129_v48 = vld [vmem:[%s1520_s2 + $0x20] sm:$0xf0]  ;;  %v1128_v49 = vld [vmem:[%s1520_s2 + $0x1c] sm:$0xf]  ;;  %v1046_v51 = vor.u32 %v1139_v45, %v1045_v44 }
  0x17   : > { %500 = vmatpush.bf16.msra.mxu1 %v1054_v17  ;;  %v1003_v50 = vld [vmem:[%s1520_s2 + $0x24] sm:$0xf0]  ;;  %v1002_v52 = vor.u32 %v1129_v48, %v1001_v47  ;;  %v1033_v53 = vld [vmem:[%s1520_s2 + $0x50] sm:$0xf]  ;;  %v1136_v54 = vld [vmem:[%s1520_s2 + $0x58] sm:$0xf0] }
  0x18   : > { %512 = vmatpush.bf16.msra.mxu2 %v1070_v33  ;;  %v1006_v55 = vor.u32 %v1128_v49, %v1003_v50  ;;  %v989_v56 = vld [vmem:[%s1520_s2] sm:$0xf]  ;;  %v1126_v57 = vld [vmem:[%s1520_s2 + $0x8] sm:$0xf0]  ;;  %v1125_v58 = vld [vmem:[%s1520_s2 + $0x4] sm:$0xf]  ;;  %v1034_v60 = vor.u32 %v1136_v54, %v1033_v53 }
  0x19   : > { %v991_v59 = vld [vmem:[%s1520_s2 + $0xc] sm:$0xf0]  ;;  %s985_s15 = sshll.u32 %s1528_s28, 2  ;;  %v990_v61 = vor.u32 %v1126_v57, %v989_v56  ;;  %v1021_v62 = vld [vmem:[%s1520_s2 + $0x38] sm:$0xf]  ;;  %vm571_vm1 = vcmask 1043456  }
  0x1a   : > { %488 = vmatpush.bf16.msra.mxu0 %v1038_v23  ;;  %v1133_v63 = vld [vmem:[%s1520_s2 + $0x40] sm:$0xf0]  ;;  %v994_v0 = vor.u32 %v1125_v58, %v991_v59  ;;  %s307_s23 = scalar_lea.vmem %s1518_s0, %s985_s15  ;;  %v1009_v3 = vld [vmem:[%s1520_s2 + $0x20] sm:$0xf]  ;;  %v1130_v4 = vld [vmem:[%s1520_s2 + $0x28] sm:$0xf0]  ;;  %s314_s25 = scalar_lea.vmem %s1526_s8, %s985_s15 }
  0x1b   : > { %501 = vmatpush.bf16.msra.mxu1 %v1042_v27  ;;  %v1022_v1 = vor.u32 %v1133_v63, %v1021_v62  ;;  %v1406_v2 = vld [vmem:[%s307_s23] sm:$0xf]  ;;  %v1010_v5 = vor.u32 %v1130_v4, %v1009_v3  ;;  %v997_v6 = vld [vmem:[%s1520_s2 + $0x8] sm:$0xf]  ;;  %v1127_v7 = vld [vmem:[%s1520_s2 + $0x10] sm:$0xf0] }
  0x1c   : > { %513 = vmatpush.bf16.msra.mxu2 %v1058_v42  ;;  %v998_v8 = vor.u32 %v1127_v7, %v997_v6  ;;  %v349_v9 = vld [vmem:[%s1521_s3] sm:$0x7]  ;;  %vm555_vm2 = vcmask 64512   ;;  %vm789_vm3 = vcmask 523264   ;;  %vm792_vm4 = vcmask 785408  }
  0x1d   : > { %v351_v10 = vperm.slane %v349_v9, 0  ;;  %v352_v11 = vperm.slane %v349_v9, 1  ;;  %v353_v25 = vperm.slane %v349_v9, 2 }
  0x1e   : > { %489 = vmatpush.bf16.msra.mxu0 %v1026_v34  ;;  %v1169_v34 = vld [vmem:[%s310_s17] ss:$0 sm:$0xff] }
  0x1f   : > { %502 = vmatpush.bf16.msra.mxu1 %v1030_v37 }
  0x20   : > { %514 = vmatpush.bf16.msra.mxu2 %v1046_v51 }
  0x22   : > { %490 = vmatpush.bf16.msra.mxu0 %v1014_v43 }
  0x23   : > { %503 = vmatpush.bf16.msra.mxu1 %v1018_v46 }
  0x24   : > { %515 = vmatpush.bf16.msra.mxu2 %v1034_v60 }
  0x26   : > { %491 = vmatpush.bf16.msra.mxu0 %v1002_v52 }
  0x27   : > { %504 = vmatpush.bf16.msra.mxu1 %v1006_v55 }
  0x28   : > { %516 = vmatpush.bf16.msra.mxu2 %v1022_v1 }
  0x2a   : > { %492 = vmatpush.bf16.msra.mxu0 %v990_v61 }
  0x2b   : > { %505 = vmatpush.bf16.msra.mxu1 %v994_v0 }
  0x2c   : > { %517 = vmatpush.bf16.msra.mxu2 %v1010_v5 }
  0x2d   : > { %493 = vmatmul.bf16.vlgmr.msra.gmra.mxu0 %v1406_v2 }
  0x2e   : > { %506 = vmatmul.bf16.vlgmr.msra.gmra.mxu1 %v1406_v2 }
  0x30   : > { %518 = vmatpush.bf16.msra.mxu2 %v998_v8 }
  0x33   : > { %519 = vmatmul.bf16.vlgmr.msra.gmra.mxu2 %v1406_v2 }
  0xaa   : > { %v494_v12 = vpop.f32.mrf.mxu0 }
  0xab   : > { %v495_v13 = vadd.f32 %v494_v12, %v351_v10  ;;  %v507_v14 = vpop.f32.mrf.mxu1 }
  0xac   : > { %v508_v15 = vadd.f32 %v507_v14, %v352_v11 }
  0xae   : > { %v524_v16 = vpack.c.bf16 %v508_v15, %v495_v13 }
  0xb0   : > { %v531_v17 = vunpack.c.h.b16 %v524_v16  ;;  %v589_v22 = vunpack.c.l.b16 %v524_v16 }
  0xb2   : > { %v496_v18 = vpop.f32.mrf.mxu0  ;;  %v532_v19 = vpack.c.b16 %v531_v17, %v531_v17  ;;  %v590_v23 = vpack.c.b16 %v589_v22, %v589_v22 }
  0xb3   : > { %v509_v20 = vpop.f32.mrf.mxu1 }
  0xb4   : > { %655 = vrot.lane.b32.xlu2 %v532_v19, %s1201_s14  ;;  %593 = vrot.lane.b32.xlu1 %v532_v19, %s1202_s16  ;;  %v538_v21 = vsel %vm533_vm0, %v532_v19, 0 }
  0xb5   : > { %547 = vmatpush.bf16.xpose.msra.mxu3 %v538_v21 }
  0xb6   : > { %v520_v24 = vpop.f32.mrf.mxu2 }
  0xb7   : > { %v521_v26 = vadd.f32 %v520_v24, %v353_v25 }
  0xb9   : > { %v1433_v28 = vpack.c.bf16 %v521_v26, %v521_v26 }
  0xbb   : > { %v573_v29 = vsel %vm571_vm1, %v1433_v28, 0  ;;  %v629_v8 = vunpack.c.l.b16 %v1433_v28 }
  0xbc   : > { %714 = vrot.lane.b32.xlu2 %v532_v19, %s1203_s18  ;;  %591 = vrot.lane.b32.xlu1 %v590_v23, %s1202_s16 }
  0xbd   : > { %1083 = vmatmul.msk.bf16.vlgmr.msra.gmra.mxu3 %vm533_vm0, %v524_v16  ;;  %v630_v9 = vpack.c.b16 %v629_v8, %v629_v8 }
  0xbe   : > { %v522_v27 = vpop.f32.mrf.mxu2  ;;  %582 = vmatpush.bf16.msrb.mxu3 %v573_v29 }
  0xc4   : > { %712 = vrot.lane.b32.xlu1 %v590_v23, %s1203_s18 }
 0x10e   : > { %v656_v30 = vpop.permute.xlu2 %655 }
 0x10f   : > { %v661_v31 = vsel %vm533_vm0, %v656_v30, 0 }
 0x110   : > { %670 = vmatpush.bf16.xpose.msrb.mxu2 %v661_v31 }
 0x116   : > { %v715_v48 = vpop.permute.xlu2 %714 }
 0x117   : > { %v720_v50 = vsel %vm533_vm0, %v715_v48, 0 }
 0x126   : > { %v594_v32 = vpop.permute.xlu1 %593 }
 0x127   : > { %v599_v33 = vsel %vm533_vm0, %v594_v32, 0 }
 0x128   : > { %608 = vmatpush.bf16.xpose.msra.mxu3 %v599_v33 }
 0x12e   : > { %v592_v52 = vpop.permute.xlu1 %591 }
 0x136   : > { %v713_v53 = vpop.permute.xlu1 %712 }
 0x140   : > { %v549_v35 = vpop.f32.mrf.mxu3 }
 0x141   : > { %v553_v36 = vmul.f32 0.17677669, %v549_v35 }
 0x143   : > { %v554_v37 = vadd.f32 %v1169_v34, %v553_v36 }
 0x145   : > { %v556_v38 = vsel %vm555_vm2, %v554_v37, -inf }
 0x146   : > { %557 = vmax.xlane.f32.xlu0 %v556_v38 }
 0x148   : > { %v551_v39 = vpop.f32.mrf.mxu3 }
 0x1b9   : > { %v558_v40 = vpop.xlane.xlu0 %557 }
 0x1ba   : > { %v559_v41 = vsub.f32 %v554_v37, %v558_v40 }
 0x1bc   : > { %v560_v42 = vmul.f32 1.442695, %v559_v41 }
 0x1be   : > { %1173 = vpow2.f32 %v560_v42 }
 0x1c4   : > { %v1174_v43 = vpop.eup %1173 }
 0x1c5   : > { %v562_v44 = vsel %vm555_vm2, %v1174_v43, 0.0 }
 0x1c6   : > { %563 = vadd.xlane.f32.xlu0 %v562_v44 }
 0x1da   : > { %653 = vrot.lane.b32.xlu0 %v590_v23, %s1201_s14 }
 0x239   : > { %v564_v45 = vpop.xlane.xlu0 %563 }
 0x23a   : > { %1175 = vrcp.f32 %v564_v45 }
 0x240   : > { %v1176_v46 = vpop.eup %1175 }
 0x241   : > { %v566_v47 = vmul.f32 %v1176_v46, %v1174_v43 }
 0x243   : > { %v567_v49 = vpack.c.bf16 %v566_v47, %v566_v47 }
 0x245   : > { %1084 = vmatmul.msk.bf16.vlgmr.msrb.gmra.mxu3 %vm555_vm2, %v567_v49 }
 0x246   : > { %729 = vmatpush.bf16.xpose.msrb.mxu3 %v720_v50 }
 0x24c   : > { %v654_v51 = vpop.permute.xlu0 %653 }
 0x24d   : > { %1087 = vmatmul.msk.bf16.vlgmr.msrb.gmra.mxu2 %vm533_vm0, %v654_v51 }
 0x255   : > { %1085 = vmatmul.msk.bf16.vlgmr.msra.gmra.mxu3 %vm533_vm0, %v592_v52 }
 0x265   : > { %1089 = vmatmul.msk.bf16.vlgmr.msrb.gmra.mxu3 %vm533_vm0, %v713_v53 }
 0x2c8   : > { %v1452_v54 = vpop.f32.mrf.mxu3 }
 0x2d0   : > { %v586_v55 = vpop.f32.mrf.mxu3  ;;  %v672_v56 = vpop.f32.mrf.mxu2 }
 0x2d1   : > { %v676_v57 = vmul.f32 0.17677669, %v672_v56 }
 0x2d3   : > { %v677_v58 = vadd.f32 %v1169_v34, %v676_v57 }
 0x2d5   : > { %v678_v59 = vsel %vm555_vm2, %v677_v58, -inf }
 0x2d6   : > { %679 = vmax.xlane.f32.xlu1 %v678_v59  ;;  %v1156_v59 = vld [vmem:[%s1522_s4 + $0x38] sm:$0xff] }
 0x2d7   : > { %864 = vmatpush.bf16.msrb.mxu1 %v1156_v59 }
 0x2d8   : > { %v610_v60 = vpop.f32.mrf.mxu3  ;;  %v674_v61 = vpop.f32.mrf.mxu2 }
 0x2d9   : > { %v614_v62 = vmul.f32 0.17677669, %v610_v60  ;;  %v1155_v60 = vld [vmem:[%s1522_s4 + $0x30] sm:$0xff]  ;;  %v1154_v61 = vld [vmem:[%s1522_s4 + $0x28] sm:$0xff] }
 0x2db   : > { %v615_v63 = vadd.f32 %v1169_v34, %v614_v62  ;;  %865 = vmatpush.bf16.msrb.mxu1 %v1155_v60  ;;  %v1153_v62 = vld [vmem:[%s1522_s4 + $0x20] sm:$0xff] }
 0x2dd   : > { %v616_v0 = vsel %vm555_vm2, %v615_v63, -inf }
 0x2de   : > { %617 = vmax.xlane.f32.xlu2 %v616_v0  ;;  %v1151_v0 = vld [vmem:[%s1522_s4 + $0x10] sm:$0xff] }
 0x2df   : > { %866 = vmatpush.bf16.msrb.mxu1 %v1154_v61 }
 0x2e0   : > { %v612_v1 = vpop.f32.mrf.mxu3 }
 0x2e1   : > { %v1150_v1 = vld [vmem:[%s1522_s4 + $0x8] sm:$0xff] }
 0x2e3   : > { %867 = vmatpush.bf16.msrb.mxu1 %v1153_v62 }
 0x2e8   : > { %v731_v3 = vpop.f32.mrf.mxu3 }
 0x2e9   : > { %v735_v4 = vmul.f32 0.17677669, %v731_v3  ;;  %v1149_v3 = vld [vmem:[%s1522_s4] sm:$0xff] }
 0x2eb   : > { %v736_v5 = vadd.f32 %v1169_v34, %v735_v4 }
 0x2ed   : > { %v737_v6 = vsel %vm555_vm2, %v736_v5, -inf }
 0x2ee   : > { %738 = vmax.xlane.f32.xlu0 %v737_v6 }
 0x2f0   : > { %v733_v7 = vpop.f32.mrf.mxu3 }
 0x302   : > { %690 = vrot.lane.b32.xlu0 %v630_v9, %s1201_s14 }
 0x349   : > { %v680_v10 = vpop.xlane.xlu1 %679 }
 0x34a   : > { %v681_v11 = vsub.f32 %v677_v58, %v680_v10 }
 0x34c   : > { %v682_v12 = vmul.f32 1.442695, %v681_v11  ;;  %v1170_v11 = vld [vmem:[%s1523_s5] ss:$0 sm:$0xff] }
 0x34e   : > { %1177 = vpow2.f32 %v682_v12  ;;  %v877_v12 = vunpack.c.l.bf16 %v1406_v2 }
 0x351   : > { %v618_v13 = vpop.xlane.xlu2 %617 }
 0x352   : > { %v619_v14 = vsub.f32 %v615_v63, %v618_v13  ;;  %v1152_v63 = vld [vmem:[%s1522_s4 + $0x18] sm:$0xff] }
 0x353   : > { %868 = vmatpush.bf16.msrb.mxu1 %v1152_v63 }
 0x354   : > { %v1178_v15 = vpop.eup %1177  ;;  %v620_v16 = vmul.f32 1.442695, %v619_v14 }
 0x355   : > { %v684_v17 = vsel %vm555_vm2, %v1178_v15, 0.0 }
 0x356   : > { %1179 = vpow2.f32 %v620_v16  ;;  %685 = vadd.xlane.f32.xlu1 %v684_v17  ;;  %v1204_v16 = vmov 128.0  }
 0x357   : > { %869 = vmatpush.bf16.msrb.mxu1 %v1151_v0 }
 0x35b   : > { %870 = vmatpush.bf16.msrb.mxu1 %v1150_v1 }
 0x35c   : > { %v1180_v18 = vpop.eup %1179 }
 0x35d   : > { %v622_v19 = vsel %vm555_vm2, %v1180_v18, 0.0 }
 0x35e   : > { %623 = vadd.xlane.f32.xlu2 %v622_v19 }
 0x35f   : > { %871 = vmatpush.bf16.msrb.mxu1 %v1149_v3 }
 0x361   : > { %v739_v20 = vpop.xlane.xlu0 %738 }
 0x362   : > { %v740_v21 = vsub.f32 %v736_v5, %v739_v20  ;;  %v588_v5 = vpack.c.bf16 %v1452_v54, %v1452_v54 }
 0x364   : > { %v741_v22 = vmul.f32 1.442695, %v740_v21 }
 0x366   : > { %1181 = vpow2.f32 %v741_v22 }
 0x36c   : > { %v1182_v23 = vpop.eup %1181 }
 0x36d   : > { %v743_v24 = vsel %vm555_vm2, %v1182_v23, 0.0 }
 0x36e   : > { %744 = vadd.xlane.f32.xlu1 %v743_v24 }
 0x374   : > { %v691_v25 = vpop.permute.xlu0 %690 }
 0x375   : > { %v696_v26 = vsel %vm571_vm1, %v691_v25, 0 }
 0x376   : > { %631 = vrot.lane.b32.xlu2 %v630_v9, %s1202_s16  ;;  %705 = vmatpush.bf16.msra.mxu2 %v696_v26 }
 0x387   : > { %749 = vrot.lane.b32.xlu1 %v630_v9, %s1203_s18 }
 0x3c9   : > { %v686_v27 = vpop.xlane.xlu1 %685 }
 0x3ca   : > { %1183 = vrcp.f32 %v686_v27 }
 0x3d0   : > { %v1184_v28 = vpop.eup %1183 }
 0x3d1   : > { %v688_v29 = vmul.f32 %v1184_v28, %v1178_v15  ;;  %v624_v30 = vpop.xlane.xlu2 %623 }
 0x3d2   : > { %1185 = vrcp.f32 %v624_v30 }
 0x3d3   : > { %v689_v31 = vpack.c.bf16 %v688_v29, %v688_v29 }
 0x3d5   : > { %1088 = vmatmul.msk.bf16.vlgmr.msra.gmra.mxu2 %vm555_vm2, %v689_v31 }
 0x3d8   : > { %v1186_v32 = vpop.eup %1185 }
 0x3d9   : > { %v626_v33 = vmul.f32 %v1186_v32, %v1180_v18  ;;  %v632_v34 = vpop.permute.xlu2 %631 }
 0x3da   : > { %v637_v35 = vsel %vm571_vm1, %v632_v34, 0 }
 0x3db   : > { %646 = vmatpush.bf16.msrb.mxu0 %v637_v35  ;;  %v627_v36 = vpack.c.bf16 %v626_v33, %v626_v33  ;;  %v1171_v35 = vld [vmem:[%s1524_s6] ss:$0 sm:$0xff] }
 0x3de   : > { %1086 = vmatmul.msk.bf16.vlgmr.msrb.gmra.mxu0 %vm555_vm2, %v627_v36 }
 0x3e1   : > { %v745_v37 = vpop.xlane.xlu1 %744 }
 0x3e2   : > { %1187 = vrcp.f32 %v745_v37  ;;  %v1172_v37 = vld [vmem:[%s1525_s7] ss:$0 sm:$0xff] }
 0x3e3   : > { %1189 = vrcp.f32 %v1204_v16 }
 0x3e8   : > { %v1188_v38 = vpop.eup %1187 }
 0x3e9   : > { %v747_v39 = vmul.f32 %v1188_v38, %v1182_v23  ;;  %v1190_v17 = vpop.eup %1189 }
 0x3ea   : > { %v884_v18 = vmul.f32 128.0, %v1190_v17  ;;  %vm888_vm5 = vweird.f32 %v1190_v17 }
 0x3eb   : > { %v748_v42 = vpack.c.bf16 %v747_v39, %v747_v39 }
 0x3ec   : > { %v885_v19 = vsub.f32 1.0, %v884_v18 }
 0x3ee   : > { %v886_v20 = vmul.f32 %v1190_v17, %v885_v19 }
 0x3f0   : > { %v887_v21 = vadd.f32 %v1190_v17, %v886_v20 }
 0x3f2   : > { %v889_v22 = vsel %vm888_vm5, %v1190_v17, %v887_v21 }
 0x3f9   : > { %v750_v40 = vpop.permute.xlu1 %749 }
 0x3fa   : > { %v755_v41 = vsel %vm571_vm1, %v750_v40, 0 }
 0x3fb   : > { %764 = vmatpush.bf16.msra.mxu0 %v755_v41 }
 0x3fe   : > { %1090 = vmatmul.msk.bf16.vlgmr.msra.gmra.mxu0 %vm555_vm2, %v748_v42 }
 0x458   : > { %v707_v43 = vpop.f32.mrf.mxu2 }
 0x459   : > { %v711_v47 = vpack.c.bf16 %v707_v43, %v707_v43 }
 0x45b   : > { %v648_v44 = vpop.f32.mrf.mxu0  ;;  %v777_v51 = vunpack.c.l.b16 %v711_v47 }
 0x45c   : > { %v652_v45 = vpack.c.bf16 %v648_v44, %v648_v44 }
 0x45d   : > { %v778_v52 = vpack.c.b16 %v777_v51, %v777_v51 }
 0x45e   : > { %v772_v46 = vunpack.c.l.b16 %v652_v45 }
 0x460   : > { %v773_v48 = vpack.c.b16 %v772_v46, %v772_v46  ;;  %v709_v49 = vpop.f32.mrf.mxu2 }
 0x462   : > { %774 = vrot.lane.b32.xlu2 %v773_v48, %s1203_s18 }
 0x463   : > { %v650_v50 = vpop.f32.mrf.mxu0 }
 0x46a   : > { %779 = vrot.lane.b32.xlu2 %v778_v52, %s1201_s14 }
 0x47b   : > { %v766_v53 = vpop.f32.mrf.mxu0 }
 0x47c   : > { %v770_v55 = vpack.c.bf16 %v766_v53, %v766_v53 }
 0x47e   : > { %v782_v56 = vunpack.c.l.b16 %v770_v55 }
 0x480   : > { %v783_v57 = vpack.c.b16 %v782_v56, %v782_v56 }
 0x482   : > { %784 = vrot.lane.b32.xlu0 %v783_v57, %s1202_s16 }
 0x483   : > { %v768_v58 = vpop.f32.mrf.mxu0 }
 0x4bc   : > { %v775_v4 = vpop.permute.xlu2 %774 }
 0x4bd   : > { %v788_v7 = vsel %vm533_vm0, %v588_v5, %v775_v4 }
 0x4c4   : > { %v780_v6 = vpop.permute.xlu2 %779 }
 0x4c5   : > { %v791_v8 = vsel %vm789_vm3, %v788_v7, %v780_v6 }
 0x4f4   : > { %v785_v9 = vpop.permute.xlu0 %784 }
 0x4f5   : > { %v794_v10 = vsel %vm792_vm4, %v791_v8, %v785_v9 }
 0x4f6   : > { %872 = vmatmul.bf16.vlgmr.msrb.gmra.mxu1 %v794_v10 }
 0x573   : > { %v873_v13 = vpop.f32.mrf.mxu1 }
 0x574   : > { %v874_v14 = vadd.f32 %v1170_v11, %v873_v13 }
 0x576   : > { %v878_v15 = vadd.f32 %v877_v12, %v874_v14 }
 0x578   : > { %881 = vadd.xlane.f32.xlu2 %v878_v15 }
 0x57b   : > { %v875_v54 = vpop.f32.mrf.mxu1 }
 0x5eb   : > { %v882_v23 = vpop.xlane.xlu2 %881 }
 0x5ec   : > { %v890_v24 = vmul.f32 %v889_v22, %v882_v23 }
 0x5ee   : > { %v891_v25 = vsub.f32 %v878_v15, %v890_v24 }
 0x5f0   : > { %v892_v26 = vmul.f32 %v891_v25, %v891_v25 }
 0x5f2   : > { %893 = vadd.xlane.f32.xlu0 %v892_v26 }
 0x665   : > { %v894_v2 = vpop.xlane.xlu0 %893 }
 0x666   : > { %v895_v27 = vmul.f32 %v894_v2, %v889_v22 }
 0x668   : > { %v896_v28 = vadd.f32 1e-12, %v895_v27 }
 0x66a   : > { %1191 = vrsqrt.f32 %v896_v28  ;;  %vm903_vm7 = vweird.f32 %v896_v28 }
 0x670   : > { %v1192_v29 = vpop.eup %1191 }
 0x671   : > { %v898_v30 = vmul.f32 %v1192_v29, %v896_v28  ;;  %vm904_vm6 = vweird.f32 %v1192_v29 }
 0x672   : > { %vm905_vm8 = vmor %vm903_vm7, %vm904_vm6 }
 0x673   : > { %v899_v31 = vmul.f32 %v1192_v29, %v898_v30 }
 0x675   : > { %v900_v32 = vmul.f32 0.5, %v899_v31 }
 0x677   : > { %v901_v33 = vsub.f32 1.5, %v900_v32 }
 0x679   : > { %v902_v34 = vmul.f32 %v1192_v29, %v901_v33 }
 0x67b   : > { %v906_v36 = vsel %vm905_vm8, %v1192_v29, %v902_v34 }
 0x67c   : > { %v907_v38 = vmul.f32 %v906_v36, %v891_v25 }
 0x67e   : > { %v911_v39 = vmul.f32 %v1171_v35, %v907_v38 }
 0x680   : > { %v915_v40 = vadd.f32 %v1172_v37, %v911_v39 }
 0x682   : > { %v916_v41 = vpack.c.bf16 %v915_v40, %v915_v40 }
 0x684   : > { %917 = vst [vmem:[%s314_s25] sm:$0xf] %v916_v41 }
 0x685 PF: > { %s18_s27 = sadd.s32 1, %s1199_s27  }
 0x686   : > { %p15_p4 = scmp.ge.s32.totalorder %s18_s27, 4  }
 0x688   :  { %17 = sbr.rel (!%p15_p4) target bundleno = 1 (0x1), region = 85 }

// kernel: bert_classifier_forward.6
= control target key start
LH: loop header
LB: loop body
LE: loop exit
PB: predicated region body
PF: predicated region fallthrough
CT: control target
= control target key end

     0   :  { %13 = vsyncpa [#allocation3], 0  ;;  %s1331_s27 = smov 0   ;;  %s1581_s0 = inlined_call_operand.vmem [shape: bf16[2,8,128], index: 0, kind: input, shape index: {}]   ;;  %s1582_s1 = inlined_call_operand.vmem [shape: f32[2,1,8], index: 1, kind: input, shape index: {}]   ;;  %s1583_s2 = inlined_call_operand.vmem [shape: bf16[128,384], index: 2, kind: input, shape index: {}]   ;;  %s1584_s3 = inlined_call_operand.vmem [shape: f32[1,384], index: 3, kind: input, shape index: {}]   ;;  %s1585_s4 = inlined_call_operand.hbm [shape: bf16[128,128], index: 4, kind: input, shape index: {}]   ;;  %s1586_s5 = inlined_call_operand.vmem [shape: f32[1,128], index: 5, kind: input, shape index: {}]   ;;  %s1587_s6 = inlined_call_operand.vmem [shape: f32[1,128], index: 6, kind: input, shape index: {}]   ;;  %s1588_s7 = inlined_call_operand.vmem [shape: f32[1,128], index: 7, kind: input, shape index: {}]   ;;  %s1589_s8 = inlined_call_operand.vmem [shape: bf16[2,8,128], index: 8, kind: output, shape index: {}]  }
   0x1 LB: > { %s245_s30 = sshll.u32 %s1585_s4, 4  ;;  %s1340_s9 = sadd.s32 4294967295, %s1277_s27   ;;  %s1277_s27 = sphi %s1331_s27, %s19_s27   ;;  %s246_s30 = int_to_ptr.hbm [resolvable:$true] %s245_s30 }
   0x2   : > { %p1011_p0 = scmp.ge.s32.totalorder %s1277_s27, 1  ;;  %p228_p1 = scmp.lt.s32.totalorder %s1277_s27, 3 }
   0x3   : > { %p1196_p2 = scmp.eq.s32.totalorder %s1340_s9, 0  ;;  %s1279_s10 = smov [#allocation2]  }
   0x4   : > { %p229_p3 = pnand %p1011_p0, %p228_p1  ;;  %s247_s11 = sshll.u32 %s1279_s10, 4  ;;  %s248_s11 = int_to_ptr.vmem [resolvable:$true] %s247_s11 }
   0x5   : > { %s1280_s12 = smov 64   ;;  %s1281_s13 = smov 4  }
   0x6   : > { %p1192_p4 = pneg %p229_p3  ;;  %285 = sbr.rel (%p229_p3) target bundleno = 1670 (0x686), region = 52 }
   0x8   : > { %p1193_p5 = pnand %p1196_p2, %p1192_p4 }
   0xa   : > { %1195 = dma.hbm_to_vmem [thread:$0]  (!%p1193_p5), %s246_s30, 1024, %s248_s11, [#allocation3], %s1280_s12, %s1280_s12, %s1281_s13  }
   0xb   : > { %1272 = dma.done.wait (%p1196_p2), [#allocation3], 1024  }
   0xc   : > { %1274 = vsyncadd (%p1196_p2), [#allocation3], 4294966272  ;;  %v1104_v0 = vld [vmem:[%s1583_s2 + $0xa8] sm:$0xf]  ;;  %v1178_v1 = vld [vmem:[%s1583_s2 + $0xb0] sm:$0xf0] }
   0xd   : > { %v1177_v2 = vld [vmem:[%s1583_s2 + $0xac] sm:$0xf]  ;;  %v1105_v3 = vor.u32 %v1178_v1, %v1104_v0  ;;  %v1106_v4 = vld [vmem:[%s1583_s2 + $0xb4] sm:$0xf0]  ;;  %v1092_v5 = vld [vmem:[%s1583_s2 + $0x90] sm:$0xf] }
   0xe   : > { %v1175_v6 = vld [vmem:[%s1583_s2 + $0x98] sm:$0xf0]  ;;  %v1109_v7 = vor.u32 %v1177_v2, %v1106_v4  ;;  %v1174_v8 = vld [vmem:[%s1583_s2 + $0x94] sm:$0xf]  ;;  %v1094_v9 = vld [vmem:[%s1583_s2 + $0x9c] sm:$0xf0] }
   0xf   : > { %502 = vmatpush.bf16.msra.mxu0 %v1105_v3  ;;  %v1093_v10 = vor.u32 %v1175_v6, %v1092_v5  ;;  %v1097_v11 = vor.u32 %v1174_v8, %v1094_v9  ;;  %v1080_v12 = vld [vmem:[%s1583_s2 + $0x78] sm:$0xf]  ;;  %v1172_v13 = vld [vmem:[%s1583_s2 + $0x80] sm:$0xf0]  ;;  %v1171_v14 = vld [vmem:[%s1583_s2 + $0x7c] sm:$0xf] }
  0x10   : > { %515 = vmatpush.bf16.msra.mxu1 %v1109_v7  ;;  %v1082_v15 = vld [vmem:[%s1583_s2 + $0x84] sm:$0xf0]  ;;  %v1081_v16 = vor.u32 %v1172_v13, %v1080_v12  ;;  %v1068_v18 = vld [vmem:[%s1583_s2 + $0x60] sm:$0xf]  ;;  %v1169_v19 = vld [vmem:[%s1583_s2 + $0x68] sm:$0xf0] }
  0x11   : > { %v1085_v17 = vor.u32 %v1171_v14, %v1082_v15  ;;  %v1168_v20 = vld [vmem:[%s1583_s2 + $0x64] sm:$0xf]  ;;  %v1070_v21 = vld [vmem:[%s1583_s2 + $0x6c] sm:$0xf0]  ;;  %p321_p6 = scmp.lt.s32.totalorder %s1340_s9, 1  ;;  %v1069_v22 = vor.u32 %v1169_v19, %v1068_v18  ;;  %vm550_vm0 = vcmask 261120  }
  0x12   : > { %v1112_v23 = vld [vmem:[%s1583_s2 + $0xb0] sm:$0xf]  ;;  %v1179_v24 = vld [vmem:[%s1583_s2 + $0xb8] sm:$0xf0]  ;;  %v1100_v25 = vld [vmem:[%s1583_s2 + $0x98] sm:$0xf]  ;;  %v1073_v26 = vor.u32 %v1168_v20, %v1070_v21 }
  0x13   : > { %503 = vmatpush.bf16.msra.mxu0 %v1093_v10  ;;  %v1056_v27 = vld [vmem:[%s1583_s2 + $0x48] sm:$0xf]  ;;  %v1166_v28 = vld [vmem:[%s1583_s2 + $0x50] sm:$0xf0]  ;;  %v1113_v29 = vor.u32 %v1179_v24, %v1112_v23  ;;  %v1176_v30 = vld [vmem:[%s1583_s2 + $0xa0] sm:$0xf0] }
  0x14   : > { %516 = vmatpush.bf16.msra.mxu1 %v1097_v11  ;;  %v1165_v31 = vld [vmem:[%s1583_s2 + $0x4c] sm:$0xf]  ;;  %v1058_v32 = vld [vmem:[%s1583_s2 + $0x54] sm:$0xf0]  ;;  %s1591_s9 = smov (!%p321_p6, %s1340_s9), 1  ;;  %v1101_v33 = vor.u32 %v1176_v30, %v1100_v25  ;;  %v1057_v34 = vor.u32 %v1166_v28, %v1056_v27  ;;  %s1282_s21 = smov 64  }
  0x15   : > { %528 = vmatpush.bf16.msra.mxu2 %v1113_v29  ;;  %v1044_v35 = vld [vmem:[%s1583_s2 + $0x30] sm:$0xf]  ;;  %s327_s26 = scalar_lea.vmem %s1582_s1, %s1591_s9  ;;  %v1088_v36 = vld [vmem:[%s1583_s2 + $0x80] sm:$0xf]  ;;  %v1173_v37 = vld [vmem:[%s1583_s2 + $0x88] sm:$0xf0]  ;;  %v1061_v38 = vor.u32 %v1165_v31, %v1058_v32 }
  0x16   : > { %v1163_v39 = vld [vmem:[%s1583_s2 + $0x38] sm:$0xf0]  ;;  %v1162_v40 = vld [vmem:[%s1583_s2 + $0x34] sm:$0xf]  ;;  %v1046_v41 = vld [vmem:[%s1583_s2 + $0x3c] sm:$0xf0]  ;;  %v1089_v42 = vor.u32 %v1173_v37, %v1088_v36 }
  0x17   : > { %504 = vmatpush.bf16.msra.mxu0 %v1081_v16  ;;  %v1045_v43 = vor.u32 %v1163_v39, %v1044_v35  ;;  %v1076_v44 = vld [vmem:[%s1583_s2 + $0x68] sm:$0xf]  ;;  %v1170_v45 = vld [vmem:[%s1583_s2 + $0x70] sm:$0xf0]  ;;  %v1049_v46 = vor.u32 %v1162_v40, %v1046_v41  ;;  %v1032_v47 = vld [vmem:[%s1583_s2 + $0x18] sm:$0xf] }
  0x18   : > { %517 = vmatpush.bf16.msra.mxu1 %v1085_v17  ;;  %v1160_v48 = vld [vmem:[%s1583_s2 + $0x20] sm:$0xf0]  ;;  %v1159_v49 = vld [vmem:[%s1583_s2 + $0x1c] sm:$0xf]  ;;  %v1034_v50 = vld [vmem:[%s1583_s2 + $0x24] sm:$0xf0]  ;;  %v1077_v51 = vor.u32 %v1170_v45, %v1076_v44 }
  0x19   : > { %529 = vmatpush.bf16.msra.mxu2 %v1101_v33  ;;  %v1033_v52 = vor.u32 %v1160_v48, %v1032_v47  ;;  %v1064_v53 = vld [vmem:[%s1583_s2 + $0x50] sm:$0xf]  ;;  %v1167_v54 = vld [vmem:[%s1583_s2 + $0x58] sm:$0xf0]  ;;  %v1037_v55 = vor.u32 %v1159_v49, %v1034_v50  ;;  %v1020_v56 = vld [vmem:[%s1583_s2] sm:$0xf] }
  0x1a   : > { %v1157_v57 = vld [vmem:[%s1583_s2 + $0x8] sm:$0xf0]  ;;  %v1156_v58 = vld [vmem:[%s1583_s2 + $0x4] sm:$0xf]  ;;  %v1022_v59 = vld [vmem:[%s1583_s2 + $0xc] sm:$0xf0]  ;;  %v1065_v60 = vor.u32 %v1167_v54, %v1064_v53 }
  0x1b   : > { %505 = vmatpush.bf16.msra.mxu0 %v1069_v22  ;;  %s1016_s22 = sshll.u32 %s1591_s9, 2  ;;  %v1021_v61 = vor.u32 %v1157_v57, %v1020_v56  ;;  %v1052_v62 = vld [vmem:[%s1583_s2 + $0x38] sm:$0xf]  ;;  %v1164_v63 = vld [vmem:[%s1583_s2 + $0x40] sm:$0xf0]  ;;  %v1025_v0 = vor.u32 %v1156_v58, %v1022_v59  ;;  %s1283_s23 = smov 96  }
  0x1c   : > { %518 = vmatpush.bf16.msra.mxu1 %v1073_v26  ;;  %s324_s10 = scalar_lea.vmem %s1581_s0, %s1016_s22  ;;  %v1053_v1 = vor.u32 %v1164_v63, %v1052_v62  ;;  %v1040_v3 = vld [vmem:[%s1583_s2 + $0x20] sm:$0xf]  ;;  %v1161_v4 = vld [vmem:[%s1583_s2 + $0x28] sm:$0xf0]  ;;  %v1028_v6 = vld [vmem:[%s1583_s2 + $0x8] sm:$0xf]  ;;  %s331_s15 = scalar_lea.vmem %s1589_s8, %s1016_s22 }
  0x1d   : > { %530 = vmatpush.bf16.msra.mxu2 %v1089_v42  ;;  %v1493_v2 = vld [vmem:[%s324_s10] sm:$0xf]  ;;  %v1041_v5 = vor.u32 %v1161_v4, %v1040_v3  ;;  %v1158_v7 = vld [vmem:[%s1583_s2 + $0x10] sm:$0xf0]  ;;  %s1284_s24 = smov 32   ;;  %vm588_vm1 = vcmask 1043456  }
  0x1e   : > { %v1029_v8 = vor.u32 %v1158_v7, %v1028_v6  ;;  %v366_v9 = vld [vmem:[%s1584_s3] sm:$0x7]  ;;  %vm572_vm2 = vcmask 64512   ;;  %vm806_vm3 = vcmask 523264   ;;  %vm809_vm4 = vcmask 785408  }
  0x1f   : > { %506 = vmatpush.bf16.msra.mxu0 %v1057_v34  ;;  %v368_v10 = vperm.slane %v366_v9, 0  ;;  %v369_v11 = vperm.slane %v366_v9, 1  ;;  %v370_v25 = vperm.slane %v366_v9, 2  ;;  %v1213_v34 = vld [vmem:[%s327_s26] ss:$0 sm:$0xff] }
  0x20   : > { %519 = vmatpush.bf16.msra.mxu1 %v1061_v38 }
  0x21   : > { %531 = vmatpush.bf16.msra.mxu2 %v1077_v51 }
  0x23   : > { %507 = vmatpush.bf16.msra.mxu0 %v1045_v43 }
  0x24   : > { %520 = vmatpush.bf16.msra.mxu1 %v1049_v46 }
  0x25   : > { %532 = vmatpush.bf16.msra.mxu2 %v1065_v60 }
  0x27   : > { %508 = vmatpush.bf16.msra.mxu0 %v1033_v52 }
  0x28   : > { %521 = vmatpush.bf16.msra.mxu1 %v1037_v55 }
  0x29   : > { %533 = vmatpush.bf16.msra.mxu2 %v1053_v1 }
  0x2b   : > { %509 = vmatpush.bf16.msra.mxu0 %v1021_v61 }
  0x2c   : > { %522 = vmatpush.bf16.msra.mxu1 %v1025_v0 }
  0x2d   : > { %534 = vmatpush.bf16.msra.mxu2 %v1041_v5 }
  0x2e   : > { %510 = vmatmul.bf16.vlgmr.msra.gmra.mxu0 %v1493_v2 }
  0x2f   : > { %523 = vmatmul.bf16.vlgmr.msra.gmra.mxu1 %v1493_v2 }
  0x31   : > { %535 = vmatpush.bf16.msra.mxu2 %v1029_v8 }
  0x34   : > { %536 = vmatmul.bf16.vlgmr.msra.gmra.mxu2 %v1493_v2 }
  0xab   : > { %v511_v12 = vpop.f32.mrf.mxu0 }
  0xac   : > { %v512_v13 = vadd.f32 %v511_v12, %v368_v10  ;;  %v524_v14 = vpop.f32.mrf.mxu1 }
  0xad   : > { %v525_v15 = vadd.f32 %v524_v14, %v369_v11 }
  0xaf   : > { %v541_v16 = vpack.c.bf16 %v525_v15, %v512_v13 }
  0xb1   : > { %v548_v17 = vunpack.c.h.b16 %v541_v16  ;;  %v606_v22 = vunpack.c.l.b16 %v541_v16 }
  0xb3   : > { %v513_v18 = vpop.f32.mrf.mxu0  ;;  %v549_v19 = vpack.c.b16 %v548_v17, %v548_v17  ;;  %v607_v23 = vpack.c.b16 %v606_v22, %v606_v22 }
  0xb4   : > { %v526_v20 = vpop.f32.mrf.mxu1 }
  0xb5   : > { %672 = vrot.lane.b32.xlu2 %v549_v19, %s1282_s21  ;;  %610 = vrot.lane.b32.xlu1 %v549_v19, %s1283_s23  ;;  %v555_v21 = vsel %vm550_vm0, %v549_v19, 0 }
  0xb6   : > { %564 = vmatpush.bf16.xpose.msra.mxu3 %v555_v21 }
  0xb7   : > { %v537_v24 = vpop.f32.mrf.mxu2 }
  0xb8   : > { %v538_v26 = vadd.f32 %v537_v24, %v370_v25 }
  0xba   : > { %v1520_v28 = vpack.c.bf16 %v538_v26, %v538_v26 }
  0xbc   : > { %v590_v29 = vsel %vm588_vm1, %v1520_v28, 0  ;;  %v646_v8 = vunpack.c.l.b16 %v1520_v28 }
  0xbd   : > { %731 = vrot.lane.b32.xlu2 %v549_v19, %s1284_s24  ;;  %608 = vrot.lane.b32.xlu1 %v607_v23, %s1283_s23 }
  0xbe   : > { %1114 = vmatmul.msk.bf16.vlgmr.msra.gmra.mxu3 %vm550_vm0, %v541_v16  ;;  %v647_v9 = vpack.c.b16 %v646_v8, %v646_v8 }
  0xbf   : > { %v539_v27 = vpop.f32.mrf.mxu2  ;;  %599 = vmatpush.bf16.msrb.mxu3 %v590_v29 }
  0xc5   : > { %729 = vrot.lane.b32.xlu1 %v607_v23, %s1284_s24 }
 0x10f   : > { %v673_v30 = vpop.permute.xlu2 %672 }
 0x110   : > { %v678_v31 = vsel %vm550_vm0, %v673_v30, 0 }
 0x111   : > { %687 = vmatpush.bf16.xpose.msrb.mxu2 %v678_v31 }
 0x117   : > { %v732_v48 = vpop.permute.xlu2 %731 }
 0x118   : > { %v737_v50 = vsel %vm550_vm0, %v732_v48, 0 }
 0x127   : > { %v611_v32 = vpop.permute.xlu1 %610 }
 0x128   : > { %v616_v33 = vsel %vm550_vm0, %v611_v32, 0 }
 0x129   : > { %625 = vmatpush.bf16.xpose.msra.mxu3 %v616_v33 }
 0x12f   : > { %v609_v52 = vpop.permute.xlu1 %608 }
 0x137   : > { %v730_v53 = vpop.permute.xlu1 %729 }
 0x141   : > { %v566_v35 = vpop.f32.mrf.mxu3 }
 0x142   : > { %v570_v36 = vmul.f32 0.17677669, %v566_v35 }
 0x144   : > { %v571_v37 = vadd.f32 %v1213_v34, %v570_v36 }
 0x146   : > { %v573_v38 = vsel %vm572_vm2, %v571_v37, -inf }
 0x147   : > { %574 = vmax.xlane.f32.xlu0 %v573_v38 }
 0x149   : > { %v568_v39 = vpop.f32.mrf.mxu3 }
 0x1ba   : > { %v575_v40 = vpop.xlane.xlu0 %574 }
 0x1bb   : > { %v576_v41 = vsub.f32 %v571_v37, %v575_v40 }
 0x1bd   : > { %v577_v42 = vmul.f32 1.442695, %v576_v41 }
 0x1bf   : > { %1217 = vpow2.f32 %v577_v42 }
 0x1c5   : > { %v1218_v43 = vpop.eup %1217 }
 0x1c6   : > { %v579_v44 = vsel %vm572_vm2, %v1218_v43, 0.0 }
 0x1c7   : > { %580 = vadd.xlane.f32.xlu0 %v579_v44 }
 0x1db   : > { %670 = vrot.lane.b32.xlu0 %v607_v23, %s1282_s21 }
 0x23a   : > { %v581_v45 = vpop.xlane.xlu0 %580 }
 0x23b   : > { %1219 = vrcp.f32 %v581_v45 }
 0x241   : > { %v1220_v46 = vpop.eup %1219 }
 0x242   : > { %v583_v47 = vmul.f32 %v1220_v46, %v1218_v43 }
 0x244   : > { %v584_v49 = vpack.c.bf16 %v583_v47, %v583_v47 }
 0x246   : > { %1115 = vmatmul.msk.bf16.vlgmr.msrb.gmra.mxu3 %vm572_vm2, %v584_v49 }
 0x247   : > { %746 = vmatpush.bf16.xpose.msrb.mxu3 %v737_v50 }
 0x24d   : > { %v671_v51 = vpop.permute.xlu0 %670 }
 0x24e   : > { %1118 = vmatmul.msk.bf16.vlgmr.msrb.gmra.mxu2 %vm550_vm0, %v671_v51 }
 0x256   : > { %1116 = vmatmul.msk.bf16.vlgmr.msra.gmra.mxu3 %vm550_vm0, %v609_v52 }
 0x266   : > { %1120 = vmatmul.msk.bf16.vlgmr.msrb.gmra.mxu3 %vm550_vm0, %v730_v53 }
 0x2c9   : > { %v1539_v54 = vpop.f32.mrf.mxu3 }
 0x2d1   : > { %v603_v55 = vpop.f32.mrf.mxu3  ;;  %v689_v56 = vpop.f32.mrf.mxu2 }
 0x2d2   : > { %v693_v57 = vmul.f32 0.17677669, %v689_v56 }
 0x2d4   : > { %v694_v58 = vadd.f32 %v1213_v34, %v693_v57 }
 0x2d6   : > { %v695_v59 = vsel %vm572_vm2, %v694_v58, -inf }
 0x2d7   : > { %696 = vmax.xlane.f32.xlu1 %v695_v59  ;;  %v1187_v59 = vld [vmem:[#allocation2 + $0x38] sm:$0xff] }
 0x2d8   : > { %881 = vmatpush.bf16.msrb.mxu1 %v1187_v59 }
 0x2d9   : > { %v627_v60 = vpop.f32.mrf.mxu3  ;;  %v691_v61 = vpop.f32.mrf.mxu2 }
 0x2da   : > { %v631_v62 = vmul.f32 0.17677669, %v627_v60  ;;  %v1186_v60 = vld [vmem:[#allocation2 + $0x30] sm:$0xff]  ;;  %v1185_v61 = vld [vmem:[#allocation2 + $0x28] sm:$0xff] }
 0x2dc   : > { %v632_v63 = vadd.f32 %v1213_v34, %v631_v62  ;;  %882 = vmatpush.bf16.msrb.mxu1 %v1186_v60  ;;  %v1184_v62 = vld [vmem:[#allocation2 + $0x20] sm:$0xff] }
 0x2de   : > { %v633_v0 = vsel %vm572_vm2, %v632_v63, -inf }
 0x2df   : > { %634 = vmax.xlane.f32.xlu2 %v633_v0  ;;  %v1182_v0 = vld [vmem:[#allocation2 + $0x10] sm:$0xff] }
 0x2e0   : > { %883 = vmatpush.bf16.msrb.mxu1 %v1185_v61 }
 0x2e1   : > { %v629_v1 = vpop.f32.mrf.mxu3 }
 0x2e2   : > { %v1181_v1 = vld [vmem:[#allocation2 + $0x8] sm:$0xff] }
 0x2e4   : > { %884 = vmatpush.bf16.msrb.mxu1 %v1184_v62 }
 0x2e9   : > { %v748_v3 = vpop.f32.mrf.mxu3 }
 0x2ea   : > { %v752_v4 = vmul.f32 0.17677669, %v748_v3  ;;  %v1180_v3 = vld [vmem:[#allocation2] sm:$0xff] }
 0x2ec   : > { %v753_v5 = vadd.f32 %v1213_v34, %v752_v4 }
 0x2ee   : > { %v754_v6 = vsel %vm572_vm2, %v753_v5, -inf }
 0x2ef   : > { %755 = vmax.xlane.f32.xlu0 %v754_v6 }
 0x2f1   : > { %v750_v7 = vpop.f32.mrf.mxu3 }
 0x303   : > { %707 = vrot.lane.b32.xlu0 %v647_v9, %s1282_s21 }
 0x34a   : > { %v697_v10 = vpop.xlane.xlu1 %696 }
 0x34b   : > { %v698_v11 = vsub.f32 %v694_v58, %v697_v10 }
 0x34d   : > { %v699_v12 = vmul.f32 1.442695, %v698_v11  ;;  %v1214_v11 = vld [vmem:[%s1586_s5] ss:$0 sm:$0xff] }
 0x34f   : > { %1221 = vpow2.f32 %v699_v12  ;;  %v894_v12 = vunpack.c.l.bf16 %v1493_v2 }
 0x352   : > { %v635_v13 = vpop.xlane.xlu2 %634 }
 0x353   : > { %v636_v14 = vsub.f32 %v632_v63, %v635_v13  ;;  %v1183_v63 = vld [vmem:[#allocation2 + $0x18] sm:$0xff] }
 0x354   : > { %885 = vmatpush.bf16.msrb.mxu1 %v1183_v63 }
 0x355   : > { %v1222_v15 = vpop.eup %1221  ;;  %v637_v16 = vmul.f32 1.442695, %v636_v14 }
 0x356   : > { %v701_v17 = vsel %vm572_vm2, %v1222_v15, 0.0 }
 0x357   : > { %1223 = vpow2.f32 %v637_v16  ;;  %702 = vadd.xlane.f32.xlu1 %v701_v17  ;;  %v1285_v16 = vmov 128.0  }
 0x358   : > { %886 = vmatpush.bf16.msrb.mxu1 %v1182_v0 }
 0x35c   : > { %887 = vmatpush.bf16.msrb.mxu1 %v1181_v1 }
 0x35d   : > { %v1224_v18 = vpop.eup %1223 }
 0x35e   : > { %v639_v19 = vsel %vm572_vm2, %v1224_v18, 0.0 }
 0x35f   : > { %640 = vadd.xlane.f32.xlu2 %v639_v19 }
 0x360   : > { %888 = vmatpush.bf16.msrb.mxu1 %v1180_v3 }
 0x362   : > { %v756_v20 = vpop.xlane.xlu0 %755 }
 0x363   : > { %v757_v21 = vsub.f32 %v753_v5, %v756_v20  ;;  %v605_v5 = vpack.c.bf16 %v1539_v54, %v1539_v54 }
 0x365   : > { %v758_v22 = vmul.f32 1.442695, %v757_v21 }
 0x367   : > { %1225 = vpow2.f32 %v758_v22 }
 0x36d   : > { %v1226_v23 = vpop.eup %1225 }
 0x36e   : > { %v760_v24 = vsel %vm572_vm2, %v1226_v23, 0.0 }
 0x36f   : > { %761 = vadd.xlane.f32.xlu1 %v760_v24 }
 0x375   : > { %v708_v25 = vpop.permute.xlu0 %707 }
 0x376   : > { %v713_v26 = vsel %vm588_vm1, %v708_v25, 0 }
 0x377   : > { %648 = vrot.lane.b32.xlu2 %v647_v9, %s1283_s23  ;;  %722 = vmatpush.bf16.msra.mxu2 %v713_v26 }
 0x388   : > { %766 = vrot.lane.b32.xlu1 %v647_v9, %s1284_s24 }
 0x3ca   : > { %v703_v27 = vpop.xlane.xlu1 %702 }
 0x3cb   : > { %1227 = vrcp.f32 %v703_v27 }
 0x3d1   : > { %v1228_v28 = vpop.eup %1227 }
 0x3d2   : > { %v705_v29 = vmul.f32 %v1228_v28, %v1222_v15  ;;  %v641_v30 = vpop.xlane.xlu2 %640 }
 0x3d3   : > { %1229 = vrcp.f32 %v641_v30 }
 0x3d4   : > { %v706_v31 = vpack.c.bf16 %v705_v29, %v705_v29 }
 0x3d6   : > { %1119 = vmatmul.msk.bf16.vlgmr.msra.gmra.mxu2 %vm572_vm2, %v706_v31 }
 0x3d9   : > { %v1230_v32 = vpop.eup %1229 }
 0x3da   : > { %v643_v33 = vmul.f32 %v1230_v32, %v1224_v18  ;;  %v649_v34 = vpop.permute.xlu2 %648 }
 0x3db   : > { %v654_v35 = vsel %vm588_vm1, %v649_v34, 0 }
 0x3dc   : > { %663 = vmatpush.bf16.msrb.mxu0 %v654_v35  ;;  %v644_v36 = vpack.c.bf16 %v643_v33, %v643_v33  ;;  %v1215_v35 = vld [vmem:[%s1587_s6] ss:$0 sm:$0xff] }
 0x3df   : > { %1117 = vmatmul.msk.bf16.vlgmr.msrb.gmra.mxu0 %vm572_vm2, %v644_v36 }
 0x3e2   : > { %v762_v37 = vpop.xlane.xlu1 %761 }
 0x3e3   : > { %1231 = vrcp.f32 %v762_v37  ;;  %v1216_v37 = vld [vmem:[%s1588_s7] ss:$0 sm:$0xff] }
 0x3e4   : > { %1233 = vrcp.f32 %v1285_v16 }
 0x3e9   : > { %v1232_v38 = vpop.eup %1231 }
 0x3ea   : > { %v764_v39 = vmul.f32 %v1232_v38, %v1226_v23  ;;  %v1234_v17 = vpop.eup %1233 }
 0x3eb   : > { %v901_v18 = vmul.f32 128.0, %v1234_v17  ;;  %vm905_vm5 = vweird.f32 %v1234_v17 }
 0x3ec   : > { %v765_v42 = vpack.c.bf16 %v764_v39, %v764_v39 }
 0x3ed   : > { %v902_v19 = vsub.f32 1.0, %v901_v18 }
 0x3ef   : > { %v903_v20 = vmul.f32 %v1234_v17, %v902_v19 }
 0x3f1   : > { %v904_v21 = vadd.f32 %v1234_v17, %v903_v20 }
 0x3f3   : > { %v906_v22 = vsel %vm905_vm5, %v1234_v17, %v904_v21 }
 0x3fa   : > { %v767_v40 = vpop.permute.xlu1 %766 }
 0x3fb   : > { %v772_v41 = vsel %vm588_vm1, %v767_v40, 0 }
 0x3fc   : > { %781 = vmatpush.bf16.msra.mxu0 %v772_v41 }
 0x3ff   : > { %1121 = vmatmul.msk.bf16.vlgmr.msra.gmra.mxu0 %vm572_vm2, %v765_v42 }
 0x459   : > { %v724_v43 = vpop.f32.mrf.mxu2 }
 0x45a   : > { %v728_v47 = vpack.c.bf16 %v724_v43, %v724_v43 }
 0x45c   : > { %v665_v44 = vpop.f32.mrf.mxu0  ;;  %v794_v51 = vunpack.c.l.b16 %v728_v47 }
 0x45d   : > { %v669_v45 = vpack.c.bf16 %v665_v44, %v665_v44 }
 0x45e   : > { %v795_v52 = vpack.c.b16 %v794_v51, %v794_v51 }
 0x45f   : > { %v789_v46 = vunpack.c.l.b16 %v669_v45 }
 0x461   : > { %v790_v48 = vpack.c.b16 %v789_v46, %v789_v46  ;;  %v726_v49 = vpop.f32.mrf.mxu2 }
 0x463   : > { %791 = vrot.lane.b32.xlu2 %v790_v48, %s1284_s24 }
 0x464   : > { %v667_v50 = vpop.f32.mrf.mxu0 }
 0x46b   : > { %796 = vrot.lane.b32.xlu2 %v795_v52, %s1282_s21 }
 0x47c   : > { %v783_v53 = vpop.f32.mrf.mxu0 }
 0x47d   : > { %v787_v55 = vpack.c.bf16 %v783_v53, %v783_v53 }
 0x47f   : > { %v799_v56 = vunpack.c.l.b16 %v787_v55 }
 0x481   : > { %v800_v57 = vpack.c.b16 %v799_v56, %v799_v56 }
 0x483   : > { %801 = vrot.lane.b32.xlu0 %v800_v57, %s1283_s23 }
 0x484   : > { %v785_v58 = vpop.f32.mrf.mxu0 }
 0x4bd   : > { %v792_v4 = vpop.permute.xlu2 %791 }
 0x4be   : > { %v805_v7 = vsel %vm550_vm0, %v605_v5, %v792_v4 }
 0x4c5   : > { %v797_v6 = vpop.permute.xlu2 %796 }
 0x4c6   : > { %v808_v8 = vsel %vm806_vm3, %v805_v7, %v797_v6 }
 0x4f5   : > { %v802_v9 = vpop.permute.xlu0 %801 }
 0x4f6   : > { %v811_v10 = vsel %vm809_vm4, %v808_v8, %v802_v9 }
 0x4f7   : > { %889 = vmatmul.bf16.vlgmr.msrb.gmra.mxu1 %v811_v10 }
 0x574   : > { %v890_v13 = vpop.f32.mrf.mxu1 }
 0x575   : > { %v891_v14 = vadd.f32 %v1214_v11, %v890_v13 }
 0x577   : > { %v895_v15 = vadd.f32 %v894_v12, %v891_v14 }
 0x579   : > { %898 = vadd.xlane.f32.xlu2 %v895_v15 }
 0x57c   : > { %v892_v54 = vpop.f32.mrf.mxu1 }
 0x5ec   : > { %v899_v23 = vpop.xlane.xlu2 %898 }
 0x5ed   : > { %v907_v24 = vmul.f32 %v906_v22, %v899_v23 }
 0x5ef   : > { %v908_v25 = vsub.f32 %v895_v15, %v907_v24 }
 0x5f1   : > { %v909_v26 = vmul.f32 %v908_v25, %v908_v25 }
 0x5f3   : > { %910 = vadd.xlane.f32.xlu0 %v909_v26 }
 0x666   : > { %v911_v2 = vpop.xlane.xlu0 %910 }
 0x667   : > { %v912_v27 = vmul.f32 %v911_v2, %v906_v22 }
 0x669   : > { %v913_v28 = vadd.f32 1e-12, %v912_v27 }
 0x66b   : > { %1235 = vrsqrt.f32 %v913_v28  ;;  %vm920_vm7 = vweird.f32 %v913_v28 }
 0x671   : > { %v1236_v29 = vpop.eup %1235 }
 0x672   : > { %v915_v30 = vmul.f32 %v1236_v29, %v913_v28  ;;  %vm921_vm6 = vweird.f32 %v1236_v29 }
 0x673   : > { %vm922_vm8 = vmor %vm920_vm7, %vm921_vm6 }
 0x674   : > { %v916_v31 = vmul.f32 %v1236_v29, %v915_v30 }
 0x676   : > { %v917_v32 = vmul.f32 0.5, %v916_v31 }
 0x678   : > { %v918_v33 = vsub.f32 1.5, %v917_v32 }
 0x67a   : > { %v919_v34 = vmul.f32 %v1236_v29, %v918_v33 }
 0x67c   : > { %v923_v36 = vsel %vm922_vm8, %v1236_v29, %v919_v34 }
 0x67d   : > { %v924_v38 = vmul.f32 %v923_v36, %v908_v25 }
 0x67f   : > { %v928_v39 = vmul.f32 %v1215_v35, %v924_v38 }
 0x681   : > { %v932_v40 = vadd.f32 %v1216_v37, %v928_v39 }
 0x683   : > { %v933_v41 = vpack.c.bf16 %v932_v40, %v932_v40 }
 0x685   : > { %934 = vst [vmem:[%s331_s15] sm:$0xf] %v933_v41 }
 0x686 PF: > { %s19_s27 = sadd.s32 1, %s1277_s27  }
 0x687   : > { %p16_p7 = scmp.ge.s32.totalorder %s19_s27, 4  }
 0x689   :  { %18 = sbr.rel (!%p16_p7) target bundleno = 1 (0x1), region = 90 }
 0x68e   :  { %954 = vsyncpa [#allocation3], 1 }
 0x68f   :  { %956 = vsyncpa [#allocation3 + $0x1], 1 }

// kernel: bert_classifier_forward.7
= control target key start
LH: loop header
LB: loop body
LE: loop exit
PB: predicated region body
PF: predicated region fallthrough
CT: control target
= control target key end

     0   :  { %s1377_s24 = smov 0   ;;  %s1712_s0 = inlined_call_operand.vmem [shape: bf16[16,128], index: 0, kind: input, shape index: {}]   ;;  %s1713_s1 = inlined_call_operand.vmem [shape: bf16[128,512], index: 1, kind: input, shape index: {}]   ;;  %s1714_s2 = inlined_call_operand.vmem [shape: f32[1,512], index: 2, kind: input, shape index: {}]   ;;  %s1715_s3 = inlined_call_operand.vmem [shape: bf16[512,128], index: 3, kind: input, shape index: {}]   ;;  %s1716_s4 = inlined_call_operand.vmem [shape: f32[1,128], index: 4, kind: input, shape index: {}]   ;;  %s1717_s5 = inlined_call_operand.vmem [shape: f32[1,128], index: 5, kind: input, shape index: {}]   ;;  %s1718_s6 = inlined_call_operand.vmem [shape: f32[1,128], index: 6, kind: input, shape index: {}]   ;;  %s1719_s7 = inlined_call_operand.vmem [shape: bf16[16,128], index: 7, kind: output, shape index: {}]  }
   0x1 LB: > { %s975_s25 = sadd.s32 4294967295, %s1334_s24   ;;  %p979_p0 = scmp.ge.s32.totalorder %s1334_s24, 1  ;;  %s1334_s24 = sphi %s1377_s24, %s17_s24  }
   0x2   : > { %p236_p1 = scmp.lt.s32.totalorder %s1334_s24, 3 }
   0x4   : > { %p237_p2 = pnand %p979_p0, %p236_p1 }
   0x5   : > { %p266_p3 = scmp.lt.s32.totalorder (!%p237_p2), %s975_s25, 1 }
   0x6   : > { %240 = sbr.rel (%p237_p2) target bundleno = 613 (0x265), region = 48 }
   0xb   : > { %v1096_v0 = vld [vmem:[%s1713_s1 + $0xe0] sm:$0xf]  ;;  %v1270_v1 = vld [vmem:[%s1713_s1 + $0xec] sm:$0xf0]  ;;  %v1268_v2 = vld [vmem:[%s1713_s1 + $0xe4] sm:$0xf] }
   0xc   : > { %v1097_v3 = vor.u32 %v1270_v1, %v1096_v0  ;;  %v1098_v4 = vld [vmem:[%s1713_s1 + $0xf0] sm:$0xf0]  ;;  %v1104_v5 = vld [vmem:[%s1713_s1 + $0xe8] sm:$0xf]  ;;  %v1271_v6 = vld [vmem:[%s1713_s1 + $0xf4] sm:$0xf0] }
   0xd   : > { %v1101_v7 = vor.u32 %v1268_v2, %v1098_v4  ;;  %v1105_v8 = vor.u32 %v1271_v6, %v1104_v5  ;;  %v1269_v9 = vld [vmem:[%s1713_s1 + $0xec] sm:$0xf]  ;;  %v1106_v10 = vld [vmem:[%s1713_s1 + $0xf8] sm:$0xf0]  ;;  %v1080_v11 = vld [vmem:[%s1713_s1 + $0xc0] sm:$0xf] }
   0xe   : > { %477 = vmatpush.bf16.msra.mxu0 %v1097_v3  ;;  %v1109_v12 = vor.u32 %v1269_v9, %v1106_v10  ;;  %v1266_v13 = vld [vmem:[%s1713_s1 + $0xcc] sm:$0xf0]  ;;  %v1264_v14 = vld [vmem:[%s1713_s1 + $0xc4] sm:$0xf]  ;;  %v1082_v15 = vld [vmem:[%s1713_s1 + $0xd0] sm:$0xf0] }
   0xf   : > { %490 = vmatpush.bf16.msra.mxu1 %v1101_v7  ;;  %503 = vmatpush.bf16.msra.mxu2 %v1105_v8  ;;  %v1081_v16 = vor.u32 %v1266_v13, %v1080_v11  ;;  %v1085_v17 = vor.u32 %v1264_v14, %v1082_v15  ;;  %v1088_v18 = vld [vmem:[%s1713_s1 + $0xc8] sm:$0xf]  ;;  %v1267_v19 = vld [vmem:[%s1713_s1 + $0xd4] sm:$0xf0]  ;;  %v1265_v20 = vld [vmem:[%s1713_s1 + $0xcc] sm:$0xf] }
  0x10   : > { %516 = vmatpush.bf16.msra.mxu3 %v1109_v12  ;;  %v1089_v21 = vor.u32 %v1267_v19, %v1088_v18  ;;  %v1090_v22 = vld [vmem:[%s1713_s1 + $0xd8] sm:$0xf0]  ;;  %v1064_v23 = vld [vmem:[%s1713_s1 + $0xa0] sm:$0xf]  ;;  %v1262_v24 = vld [vmem:[%s1713_s1 + $0xac] sm:$0xf0] }
  0x11   : > { %v1093_v25 = vor.u32 %v1265_v20, %v1090_v22  ;;  %v1260_v26 = vld [vmem:[%s1713_s1 + $0xa4] sm:$0xf]  ;;  %v1066_v27 = vld [vmem:[%s1713_s1 + $0xb0] sm:$0xf0]  ;;  %v1072_v28 = vld [vmem:[%s1713_s1 + $0xa8] sm:$0xf]  ;;  %v1065_v29 = vor.u32 %v1262_v24, %v1064_v23 }
  0x12   : > { %478 = vmatpush.bf16.msra.mxu0 %v1081_v16  ;;  %v1263_v30 = vld [vmem:[%s1713_s1 + $0xb4] sm:$0xf0]  ;;  %v1261_v31 = vld [vmem:[%s1713_s1 + $0xac] sm:$0xf]  ;;  %v1074_v32 = vld [vmem:[%s1713_s1 + $0xb8] sm:$0xf0]  ;;  %v1069_v33 = vor.u32 %v1260_v26, %v1066_v27 }
  0x13   : > { %491 = vmatpush.bf16.msra.mxu1 %v1085_v17  ;;  %504 = vmatpush.bf16.msra.mxu2 %v1089_v21  ;;  %v1073_v34 = vor.u32 %v1263_v30, %v1072_v28  ;;  %v1048_v35 = vld [vmem:[%s1713_s1 + $0x80] sm:$0xf]  ;;  %v1258_v36 = vld [vmem:[%s1713_s1 + $0x8c] sm:$0xf0]  ;;  %v1256_v37 = vld [vmem:[%s1713_s1 + $0x84] sm:$0xf]  ;;  %v1077_v38 = vor.u32 %v1261_v31, %v1074_v32 }
  0x14   : > { %517 = vmatpush.bf16.msra.mxu3 %v1093_v25  ;;  %v1050_v39 = vld [vmem:[%s1713_s1 + $0x90] sm:$0xf0]  ;;  %v1056_v40 = vld [vmem:[%s1713_s1 + $0x88] sm:$0xf]  ;;  %v1259_v41 = vld [vmem:[%s1713_s1 + $0x94] sm:$0xf0]  ;;  %v1049_v44 = vor.u32 %v1258_v36, %v1048_v35 }
  0x15   : > { %v1257_v42 = vld [vmem:[%s1713_s1 + $0x8c] sm:$0xf]  ;;  %v1058_v43 = vld [vmem:[%s1713_s1 + $0x98] sm:$0xf0]  ;;  %v1053_v45 = vor.u32 %v1256_v37, %v1050_v39  ;;  %v1057_v46 = vor.u32 %v1259_v41, %v1056_v40  ;;  %v1032_v47 = vld [vmem:[%s1713_s1 + $0x60] sm:$0xf] }
  0x16   : > { %479 = vmatpush.bf16.msra.mxu0 %v1065_v29  ;;  %v1254_v48 = vld [vmem:[%s1713_s1 + $0x6c] sm:$0xf0]  ;;  %v1252_v49 = vld [vmem:[%s1713_s1 + $0x64] sm:$0xf]  ;;  %v1061_v50 = vor.u32 %v1257_v42, %v1058_v43  ;;  %v1034_v51 = vld [vmem:[%s1713_s1 + $0x70] sm:$0xf0] }
  0x17   : > { %492 = vmatpush.bf16.msra.mxu1 %v1069_v33  ;;  %505 = vmatpush.bf16.msra.mxu2 %v1073_v34  ;;  %v1040_v52 = vld [vmem:[%s1713_s1 + $0x68] sm:$0xf]  ;;  %v1255_v53 = vld [vmem:[%s1713_s1 + $0x74] sm:$0xf0]  ;;  %v1253_v54 = vld [vmem:[%s1713_s1 + $0x6c] sm:$0xf]  ;;  %v1033_v56 = vor.u32 %v1254_v48, %v1032_v47  ;;  %v1037_v57 = vor.u32 %v1252_v49, %v1034_v51 }
  0x18   : > { %518 = vmatpush.bf16.msra.mxu3 %v1077_v38  ;;  %v1042_v55 = vld [vmem:[%s1713_s1 + $0x78] sm:$0xf0]  ;;  %v1041_v58 = vor.u32 %v1255_v53, %v1040_v52  ;;  %v1016_v59 = vld [vmem:[%s1713_s1 + $0x40] sm:$0xf]  ;;  %v1250_v60 = vld [vmem:[%s1713_s1 + $0x4c] sm:$0xf0] }
  0x19   : > { %v1248_v61 = vld [vmem:[%s1713_s1 + $0x44] sm:$0xf]  ;;  %v1045_v62 = vor.u32 %v1253_v54, %v1042_v55  ;;  %v1018_v63 = vld [vmem:[%s1713_s1 + $0x50] sm:$0xf0]  ;;  %v1024_v0 = vld [vmem:[%s1713_s1 + $0x48] sm:$0xf]  ;;  %v1017_v4 = vor.u32 %v1250_v60, %v1016_v59 }
  0x1a   : > { %480 = vmatpush.bf16.msra.mxu0 %v1049_v44  ;;  %v1251_v1 = vld [vmem:[%s1713_s1 + $0x54] sm:$0xf0]  ;;  %v1249_v2 = vld [vmem:[%s1713_s1 + $0x4c] sm:$0xf]  ;;  %v1026_v3 = vld [vmem:[%s1713_s1 + $0x58] sm:$0xf0]  ;;  %v1021_v7 = vor.u32 %v1248_v61, %v1018_v63 }
  0x1b   : > { %493 = vmatpush.bf16.msra.mxu1 %v1053_v45  ;;  %506 = vmatpush.bf16.msra.mxu2 %v1057_v46  ;;  %v1000_v5 = vld [vmem:[%s1713_s1 + $0x20] sm:$0xf]  ;;  %v1246_v6 = vld [vmem:[%s1713_s1 + $0x2c] sm:$0xf0]  ;;  %v1025_v8 = vor.u32 %v1251_v1, %v1024_v0  ;;  %v1244_v9 = vld [vmem:[%s1713_s1 + $0x24] sm:$0xf]  ;;  %v1029_v12 = vor.u32 %v1249_v2, %v1026_v3 }
  0x1c   : > { %519 = vmatpush.bf16.msra.mxu3 %v1061_v50  ;;  %v1002_v10 = vld [vmem:[%s1713_s1 + $0x30] sm:$0xf0]  ;;  %v1008_v11 = vld [vmem:[%s1713_s1 + $0x28] sm:$0xf]  ;;  %v1247_v13 = vld [vmem:[%s1713_s1 + $0x34] sm:$0xf0]  ;;  %v1001_v16 = vor.u32 %v1246_v6, %v1000_v5 }
  0x1d   : > { %v1245_v14 = vld [vmem:[%s1713_s1 + $0x2c] sm:$0xf]  ;;  %v1010_v15 = vld [vmem:[%s1713_s1 + $0x38] sm:$0xf0]  ;;  %v984_v17 = vld [vmem:[%s1713_s1] sm:$0xf]  ;;  %v1005_v18 = vor.u32 %v1244_v9, %v1002_v10  ;;  %v1009_v19 = vor.u32 %v1247_v13, %v1008_v11 }
  0x1e   : > { %481 = vmatpush.bf16.msra.mxu0 %v1033_v56  ;;  %s1721_s25 = smov (!%p266_p3, %s975_s25), 1  ;;  %v1242_v20 = vld [vmem:[%s1713_s1 + $0xc] sm:$0xf0]  ;;  %v1240_v21 = vld [vmem:[%s1713_s1 + $0x4] sm:$0xf]  ;;  %v1013_v23 = vor.u32 %v1245_v14, %v1010_v15  ;;  %v1279_v32 = vld [vmem:[%s1715_s3 + $0x38] sm:$0xff] }
  0x1f   : > { %494 = vmatpush.bf16.msra.mxu1 %v1037_v57  ;;  %507 = vmatpush.bf16.msra.mxu2 %v1041_v58  ;;  %v986_v22 = vld [vmem:[%s1713_s1 + $0x10] sm:$0xf0]  ;;  %v992_v24 = vld [vmem:[%s1713_s1 + $0x8] sm:$0xf]  ;;  %v1243_v25 = vld [vmem:[%s1713_s1 + $0x14] sm:$0xf0]  ;;  %v985_v28 = vor.u32 %v1242_v20, %v984_v17 }
  0x20   : > { %520 = vmatpush.bf16.msra.mxu3 %v1045_v62  ;;  %s980_s22 = sshll.u32 %s1721_s25, 2  ;;  %v1241_v26 = vld [vmem:[%s1713_s1 + $0xc] sm:$0xf]  ;;  %v994_v27 = vld [vmem:[%s1713_s1 + $0x18] sm:$0xf0]  ;;  %v989_v29 = vor.u32 %v1240_v21, %v986_v22  ;;  %v993_v30 = vor.u32 %v1243_v25, %v992_v24  ;;  %v1278_v35 = vld [vmem:[%s1715_s3 + $0x30] sm:$0xff] }
  0x21   : > { %s269_s8 = scalar_lea.vmem %s1712_s0, %s980_s22  ;;  %v997_v31 = vor.u32 %v1241_v26, %v994_v27  ;;  %v1287_v33 = vld [vmem:[%s1715_s3 + $0x78] sm:$0xff]  ;;  %v1286_v36 = vld [vmem:[%s1715_s3 + $0x70] sm:$0xff]  ;;  %v1277_v39 = vld [vmem:[%s1715_s3 + $0x28] sm:$0xff]  ;;  %s273_s26 = scalar_lea.vmem %s1719_s7, %s980_s22 }
  0x22   : > { %482 = vmatpush.bf16.msra.mxu0 %v1017_v4  ;;  %v1595_v34 = vld [vmem:[%s269_s8] sm:$0xf]  ;;  %v1295_v37 = vld [vmem:[%s1715_s3 + $0xb8] sm:$0xff]  ;;  %v1285_v40 = vld [vmem:[%s1715_s3 + $0x68] sm:$0xff] }
  0x23   : > { %495 = vmatpush.bf16.msra.mxu1 %v1021_v7  ;;  %508 = vmatpush.bf16.msra.mxu2 %v1025_v8  ;;  %v1303_v38 = vld [vmem:[%s1715_s3 + $0xf8] sm:$0xff]  ;;  %v1294_v41 = vld [vmem:[%s1715_s3 + $0xb0] sm:$0xff]  ;;  %v1276_v43 = vld [vmem:[%s1715_s3 + $0x20] sm:$0xff] }
  0x24   : > { %521 = vmatpush.bf16.msra.mxu3 %v1029_v12  ;;  %v1302_v42 = vld [vmem:[%s1715_s3 + $0xf0] sm:$0xff]  ;;  %v1284_v44 = vld [vmem:[%s1715_s3 + $0x60] sm:$0xff]  ;;  %v1293_v45 = vld [vmem:[%s1715_s3 + $0xa8] sm:$0xff] }
  0x25   : > { %v1301_v46 = vld [vmem:[%s1715_s3 + $0xe8] sm:$0xff]  ;;  %v1275_v47 = vld [vmem:[%s1715_s3 + $0x18] sm:$0xff]  ;;  %v1292_v49 = vld [vmem:[%s1715_s3 + $0xa0] sm:$0xff] }
  0x26   : > { %483 = vmatpush.bf16.msra.mxu0 %v1001_v16  ;;  %v1283_v48 = vld [vmem:[%s1715_s3 + $0x58] sm:$0xff]  ;;  %v1300_v50 = vld [vmem:[%s1715_s3 + $0xe0] sm:$0xff]  ;;  %v1274_v51 = vld [vmem:[%s1715_s3 + $0x10] sm:$0xff] }
  0x27   : > { %496 = vmatpush.bf16.msra.mxu1 %v1005_v18  ;;  %509 = vmatpush.bf16.msra.mxu2 %v1009_v19  ;;  %v1282_v52 = vld [vmem:[%s1715_s3 + $0x50] sm:$0xff]  ;;  %v1291_v53 = vld [vmem:[%s1715_s3 + $0x98] sm:$0xff]  ;;  %v1273_v55 = vld [vmem:[%s1715_s3 + $0x8] sm:$0xff] }
  0x28   : > { %522 = vmatpush.bf16.msra.mxu3 %v1013_v23  ;;  %v1299_v54 = vld [vmem:[%s1715_s3 + $0xd8] sm:$0xff]  ;;  %v1281_v56 = vld [vmem:[%s1715_s3 + $0x48] sm:$0xff]  ;;  %v1290_v57 = vld [vmem:[%s1715_s3 + $0x90] sm:$0xff] }
  0x29   : > { %v1298_v58 = vld [vmem:[%s1715_s3 + $0xd0] sm:$0xff]  ;;  %v1272_v59 = vld [vmem:[%s1715_s3] sm:$0xff]  ;;  %v1289_v61 = vld [vmem:[%s1715_s3 + $0x88] sm:$0xff] }
  0x2a   : > { %484 = vmatpush.bf16.msra.mxu0 %v985_v28  ;;  %v1280_v60 = vld [vmem:[%s1715_s3 + $0x40] sm:$0xff]  ;;  %v1297_v62 = vld [vmem:[%s1715_s3 + $0xc8] sm:$0xff] }
  0x2b   : > { %497 = vmatpush.bf16.msra.mxu1 %v989_v29  ;;  %510 = vmatpush.bf16.msra.mxu2 %v993_v30  ;;  %v307_v63 = vld [vmem:[%s1714_s2] sm:$0xf] }
  0x2c   : > { %523 = vmatpush.bf16.msra.mxu3 %v997_v31  ;;  %v309_v0 = vperm.slane %v307_v63, 0  ;;  %v1288_v1 = vld [vmem:[%s1715_s3 + $0x80] sm:$0xff]  ;;  %v310_v3 = vperm.slane %v307_v63, 1  ;;  %v311_v10 = vperm.slane %v307_v63, 2  ;;  %v312_v12 = vperm.slane %v307_v63, 3 }
  0x2d   : > { %485 = vmatmul.bf16.vlgmr.msra.gmra.mxu0 %v1595_v34  ;;  %v1296_v2 = vld [vmem:[%s1715_s3 + $0xc0] sm:$0xff] }
  0x2e   : > { %829 = vmatpush.bf16.msrb.mxu0 %v1279_v32  ;;  %498 = vmatmul.bf16.vlgmr.msra.gmra.mxu1 %v1595_v34 }
  0x2f   : > { %842 = vmatpush.bf16.msrb.mxu1 %v1287_v33  ;;  %511 = vmatmul.bf16.vlgmr.msra.gmra.mxu2 %v1595_v34 }
  0x30   : > { %524 = vmatmul.bf16.vlgmr.msra.gmra.mxu3 %v1595_v34  ;;  %855 = vmatpush.bf16.msrb.mxu2 %v1295_v37 }
  0x31   : > { %868 = vmatpush.bf16.msrb.mxu3 %v1303_v38 }
  0x32   : > { %830 = vmatpush.bf16.msrb.mxu0 %v1278_v35 }
  0x33   : > { %843 = vmatpush.bf16.msrb.mxu1 %v1286_v36 }
  0x34   : > { %856 = vmatpush.bf16.msrb.mxu2 %v1294_v41 }
  0x35   : > { %869 = vmatpush.bf16.msrb.mxu3 %v1302_v42 }
  0x36   : > { %831 = vmatpush.bf16.msrb.mxu0 %v1277_v39 }
  0x37   : > { %844 = vmatpush.bf16.msrb.mxu1 %v1285_v40 }
  0x38   : > { %857 = vmatpush.bf16.msrb.mxu2 %v1293_v45 }
  0x39   : > { %870 = vmatpush.bf16.msrb.mxu3 %v1301_v46 }
  0x3a   : > { %832 = vmatpush.bf16.msrb.mxu0 %v1276_v43 }
  0x3b   : > { %845 = vmatpush.bf16.msrb.mxu1 %v1284_v44 }
  0x3c   : > { %858 = vmatpush.bf16.msrb.mxu2 %v1292_v49 }
  0x3d   : > { %871 = vmatpush.bf16.msrb.mxu3 %v1300_v50 }
  0x3e   : > { %833 = vmatpush.bf16.msrb.mxu0 %v1275_v47 }
  0x3f   : > { %846 = vmatpush.bf16.msrb.mxu1 %v1283_v48 }
  0x40   : > { %859 = vmatpush.bf16.msrb.mxu2 %v1291_v53 }
  0x41   : > { %872 = vmatpush.bf16.msrb.mxu3 %v1299_v54 }
  0x42   : > { %834 = vmatpush.bf16.msrb.mxu0 %v1274_v51 }
  0x43   : > { %847 = vmatpush.bf16.msrb.mxu1 %v1282_v52 }
  0x44   : > { %860 = vmatpush.bf16.msrb.mxu2 %v1290_v57 }
  0x45   : > { %873 = vmatpush.bf16.msrb.mxu3 %v1298_v58 }
  0x46   : > { %835 = vmatpush.bf16.msrb.mxu0 %v1273_v55 }
  0x47   : > { %848 = vmatpush.bf16.msrb.mxu1 %v1281_v56 }
  0x48   : > { %861 = vmatpush.bf16.msrb.mxu2 %v1289_v61  ;;  %v1313_v61 = vld [vmem:[%s1716_s4] ss:$0 sm:$0xff] }
  0x49   : > { %874 = vmatpush.bf16.msrb.mxu3 %v1297_v62 }
  0x4a   : > { %836 = vmatpush.bf16.msrb.mxu0 %v1272_v59 }
  0x4b   : > { %849 = vmatpush.bf16.msrb.mxu1 %v1280_v60 }
  0x4c   : > { %862 = vmatpush.bf16.msrb.mxu2 %v1288_v1 }
  0x4d   : > { %875 = vmatpush.bf16.msrb.mxu3 %v1296_v2 }
  0xaa   : > { %v486_v4 = vpop.f32.mrf.mxu0 }
  0xab   : > { %v487_v5 = vadd.f32 %v486_v4, %v309_v0  ;;  %v499_v6 = vpop.f32.mrf.mxu1 }
  0xac   : > { %v500_v7 = vadd.f32 %v499_v6, %v310_v3 }
  0xad   : > { %v529_v8 = vmul.f32 %v487_v5, %v487_v5 }
  0xae   : > { %v530_v9 = vmul.f32 %v500_v7, %v500_v7 }
  0xaf   : > { %v533_v11 = vmul.f32 %v529_v8, %v487_v5 }
  0xb0   : > { %v534_v13 = vmul.f32 %v530_v9, %v500_v7 }
  0xb1   : > { %v537_v14 = vmul.f32 0.044715, %v533_v11 }
  0xb2   : > { %v512_v15 = vpop.f32.mrf.mxu2  ;;  %v538_v16 = vmul.f32 0.044715, %v534_v13  ;;  %v488_v19 = vpop.f32.mrf.mxu0 }
  0xb3   : > { %v513_v17 = vadd.f32 %v512_v15, %v311_v10  ;;  %v525_v18 = vpop.f32.mrf.mxu3  ;;  %v541_v20 = vadd.f32 %v537_v14, %v487_v5  ;;  %v501_v22 = vpop.f32.mrf.mxu1  ;;  %v1336_v10 = vmov 128.0  }
  0xb4   : > { %v526_v21 = vadd.f32 %v525_v18, %v312_v12  ;;  %v542_v23 = vadd.f32 %v538_v16, %v500_v7 }
  0xb5   : > { %v531_v24 = vmul.f32 %v513_v17, %v513_v17  ;;  %v545_v25 = vmul.f32 0.7978846, %v541_v20 }
  0xb6   : > { %v532_v26 = vmul.f32 %v526_v21, %v526_v21  ;;  %v546_v27 = vmul.f32 0.7978846, %v542_v23 }
  0xb7   : > { %v535_v28 = vmul.f32 %v531_v24, %v513_v17  ;;  %1316 = vtanh.f32 %v545_v25 }
  0xb8   : > { %v536_v29 = vmul.f32 %v532_v26, %v526_v21  ;;  %1318 = vtanh.f32 %v546_v27 }
  0xb9   : > { %v539_v30 = vmul.f32 0.044715, %v535_v28 }
  0xba   : > { %v540_v31 = vmul.f32 0.044715, %v536_v29  ;;  %v514_v32 = vpop.f32.mrf.mxu2  ;;  %v1314_v29 = vld [vmem:[%s1717_s5] ss:$0 sm:$0xff] }
  0xbb   : > { %v543_v33 = vadd.f32 %v539_v30, %v513_v17  ;;  %v527_v35 = vpop.f32.mrf.mxu3 }
  0xbc   : > { %v544_v36 = vadd.f32 %v540_v31, %v526_v21  ;;  %v1315_v31 = vld [vmem:[%s1718_s6] ss:$0 sm:$0xff] }
  0xbd   : > { %v547_v37 = vmul.f32 0.7978846, %v543_v33  ;;  %v1317_v38 = vpop.eup %1316 }
  0xbe   : > { %v548_v39 = vmul.f32 0.7978846, %v544_v36  ;;  %v1319_v40 = vpop.eup %1318  ;;  %v553_v41 = vadd.f32 1.0, %v1317_v38 }
  0xbf   : > { %1320 = vtanh.f32 %v547_v37  ;;  %v554_v42 = vadd.f32 1.0, %v1319_v40 }
  0xc0   : > { %1322 = vtanh.f32 %v548_v39  ;;  %v557_v43 = vmul.f32 0.5, %v553_v41 }
  0xc1   : > { %v558_v44 = vmul.f32 0.5, %v554_v42  ;;  %1324 = vrcp.f32 %v1336_v10 }
  0xc2   : > { %v561_v45 = vmul.f32 %v557_v43, %v487_v5  ;;  %v881_v5 = vunpack.c.l.bf16 %v1595_v34 }
  0xc3   : > { %v562_v46 = vmul.f32 %v558_v44, %v500_v7 }
  0xc4   : > { %v565_v48 = vpack.c.bf16 %v561_v45, %v561_v45 }
  0xc5   : > { %v1321_v47 = vpop.eup %1320  ;;  %v566_v50 = vpack.c.bf16 %v562_v46, %v562_v46 }
  0xc6   : > { %v1323_v49 = vpop.eup %1322  ;;  %v555_v51 = vadd.f32 1.0, %v1321_v47  ;;  %837 = vmatmul.bf16.vlgmr.msrb.gmra.mxu0 %v565_v48 }
  0xc7   : > { %v556_v52 = vadd.f32 1.0, %v1323_v49  ;;  %850 = vmatmul.bf16.vlgmr.msrb.gmra.mxu1 %v566_v50  ;;  %v1325_v11 = vpop.eup %1324 }
  0xc8   : > { %v559_v53 = vmul.f32 0.5, %v555_v51  ;;  %v888_v12 = vmul.f32 128.0, %v1325_v11  ;;  %vm892_vm0 = vweird.f32 %v1325_v11 }
  0xc9   : > { %v560_v54 = vmul.f32 0.5, %v556_v52 }
  0xca   : > { %v563_v55 = vmul.f32 %v559_v53, %v513_v17  ;;  %v889_v13 = vsub.f32 1.0, %v888_v12 }
  0xcb   : > { %v564_v56 = vmul.f32 %v560_v54, %v526_v21 }
  0xcc   : > { %v567_v57 = vpack.c.bf16 %v563_v55, %v563_v55  ;;  %v890_v14 = vmul.f32 %v1325_v11, %v889_v13 }
  0xcd   : > { %v568_v58 = vpack.c.bf16 %v564_v56, %v564_v56 }
  0xce   : > { %863 = vmatmul.bf16.vlgmr.msrb.gmra.mxu2 %v567_v57  ;;  %v891_v15 = vadd.f32 %v1325_v11, %v890_v14 }
  0xcf   : > { %876 = vmatmul.bf16.vlgmr.msrb.gmra.mxu3 %v568_v58 }
  0xd0   : > { %v893_v16 = vsel %vm892_vm0, %v1325_v11, %v891_v15 }
 0x143   : > { %v838_v59 = vpop.f32.mrf.mxu0 }
 0x144   : > { %v851_v60 = vpop.f32.mrf.mxu1  ;;  %v839_v62 = vadd.f32 %v1313_v61, %v838_v59 }
 0x146   : > { %v852_v1 = vadd.f32 %v851_v60, %v839_v62 }
 0x14b   : > { %v840_v63 = vpop.f32.mrf.mxu0 }
 0x14c   : > { %v853_v0 = vpop.f32.mrf.mxu1 }
 0x151   : > { %v864_v2 = vpop.f32.mrf.mxu2 }
 0x152   : > { %v865_v3 = vadd.f32 %v864_v2, %v852_v1  ;;  %v877_v4 = vpop.f32.mrf.mxu3 }
 0x154   : > { %v878_v6 = vadd.f32 %v877_v4, %v865_v3 }
 0x156   : > { %v882_v7 = vadd.f32 %v881_v5, %v878_v6 }
 0x158   : > { %885 = vadd.xlane.f32.xlu0 %v882_v7 }
 0x159   : > { %v866_v8 = vpop.f32.mrf.mxu2 }
 0x15a   : > { %v879_v9 = vpop.f32.mrf.mxu3 }
 0x1cb   : > { %v886_v17 = vpop.xlane.xlu0 %885 }
 0x1cc   : > { %v894_v18 = vmul.f32 %v893_v16, %v886_v17 }
 0x1ce   : > { %v895_v19 = vsub.f32 %v882_v7, %v894_v18 }
 0x1d0   : > { %v896_v20 = vmul.f32 %v895_v19, %v895_v19 }
 0x1d2   : > { %897 = vadd.xlane.f32.xlu0 %v896_v20 }
 0x245   : > { %v898_v34 = vpop.xlane.xlu0 %897 }
 0x246   : > { %v899_v21 = vmul.f32 %v898_v34, %v893_v16 }
 0x248   : > { %v900_v22 = vadd.f32 1e-12, %v899_v21 }
 0x24a   : > { %1326 = vrsqrt.f32 %v900_v22  ;;  %vm907_vm2 = vweird.f32 %v900_v22 }
 0x250   : > { %v1327_v23 = vpop.eup %1326 }
 0x251   : > { %v902_v24 = vmul.f32 %v1327_v23, %v900_v22  ;;  %vm908_vm1 = vweird.f32 %v1327_v23 }
 0x252   : > { %vm909_vm3 = vmor %vm907_vm2, %vm908_vm1 }
 0x253   : > { %v903_v25 = vmul.f32 %v1327_v23, %v902_v24 }
 0x255   : > { %v904_v26 = vmul.f32 0.5, %v903_v25 }
 0x257   : > { %v905_v27 = vsub.f32 1.5, %v904_v26 }
 0x259   : > { %v906_v28 = vmul.f32 %v1327_v23, %v905_v27 }
 0x25b   : > { %v910_v30 = vsel %vm909_vm3, %v1327_v23, %v906_v28 }
 0x25c   : > { %v911_v32 = vmul.f32 %v910_v30, %v895_v19 }
 0x25e   : > { %v915_v33 = vmul.f32 %v1314_v29, %v911_v32 }
 0x260   : > { %v919_v35 = vadd.f32 %v1315_v31, %v915_v33 }
 0x262   : > { %v920_v36 = vpack.c.bf16 %v919_v35, %v919_v35 }
 0x264   : > { %921 = vst [vmem:[%s273_s26] sm:$0xf] %v920_v36 }
 0x265 PF: > { %s17_s24 = sadd.s32 1, %s1334_s24  }
 0x266   : > { %p14_p4 = scmp.ge.s32.totalorder %s17_s24, 4  }
 0x268   :  { %16 = sbr.rel (!%p14_p4) target bundleno = 1 (0x1), region = 78 }

</bundles_post_ra>
